<compile_context>
chip_gen: v6e
topology: v6e:2x2x1
jax: 0.10.0
libtpu: 0.0.40
codegen_flags: <defaults>
</compile_context>

<pallas_src>
import math

import numpy as np
import jax
import jax.numpy as jnp
from jax import lax
from jax.experimental import pallas as pl
from jax.experimental.pallas import tpu as pltpu

LEAKY_SLOPE = 0.2   # TODO(synk): MyConv2d's 'leaky' negative slope is not shown; assuming 0.2.
EPS = 1e-5          # TODO(synk): eval-mode BatchNorm only (running stats folded into scale/shift).


# ---------------------------------------------------------------------------
# Fused Pallas kernel: 3x (conv+BN+LeakyReLU) -> avg-pool -> EqualLinear(fused_lrelu)
# ---------------------------------------------------------------------------
def _make_kernel(compute_dtype, block_batch, h_in):
    def kernel(x_ref, t1, r1, s1, t2, r2, s2, t3, r3, s3, pm_ref, fcw_ref, fcb_ref, o_ref):
        # x_ref block: (Bb, H, W*C) for block_batch consecutive batch elements; fold batch into
        # the matmul M dimension (major-dim merge, layout-free since H % 8 == 0).
        a = x_ref[...].reshape(block_batch * h_in, -1).astype(compute_dtype)   # (Bb*H, W*C)

        for t_ref, r_ref, s_ref in ((t1, r1, s1), (t2, r2, s2), (t3, r3, s3)):
            # Stride-2 row selection FIRST (tiny block-diagonal 0/1 matmuls) -> halves the heavy
            # matmul's M dim; then one deep-K MXU matmul over all 3 kh taps (T_cat pre-stacked).
            sel = [
                jnp.dot(r_ref[kh], a, preferred_element_type=jnp.float32).astype(compute_dtype)
                for kh in range(3)
            ]
            a_cat = jnp.concatenate(sel, axis=-1)                      # (Bb*Hout, 3*W*C)
            z = jnp.dot(a_cat, t_ref[...], preferred_element_type=jnp.float32)
            z = z + s_ref[...]                                         # folded conv-bias + BN shift
            z = jnp.where(z > 0, z, LEAKY_SLOPE * z)                   # f32 epilogue (v5e-safe)
            a = z.astype(compute_dtype)                                # (Bb*Hout, Wout*C)

        # AdaptiveAvgPool2d(1) + EqualLinear + fused_lrelu:
        # per-batch row sums via a block-diagonal 0/1 pool matmul; the pooling average, the
        # 1/sqrt(in) EqualLinear scale and fused_lrelu's sqrt(2) are folded into fcw / fcb.
        colsum = jnp.dot(pm_ref[...], a, preferred_element_type=jnp.float32)   # (Bb, W3*C)
        z = jnp.dot(colsum.astype(compute_dtype), fcw_ref[...],
                    preferred_element_type=jnp.float32) + fcb_ref[...]         # (Bb, O_pad)
        o_ref[0] = jnp.where(z > 0, z, LEAKY_SLOPE * z)                        # lane-dense store

    return kernel


def _vmem_limit_bytes(weight_bytes, x_block_bytes, out_block_bytes, single_buffer):
    """Size the VMEM limit from actual operand footprints, clamped to the chip's capacity."""
    wmult = 1 if single_buffer else 2
    need = wmult * weight_bytes + 2 * (x_block_bytes + out_block_bytes) + (8 << 20)
    try:
        cap = int(pltpu.get_tpu_info().vmem_capacity_bytes)
    except Exception:
        cap = 64 << 20      # conservative (v7x physical VMEM)
    return int(max(16 << 20, min(need, int(cap * 0.85))))


def to_style_pallas(x2d, prep):
    B, H, WC = x2d.shape
    Bb = prep["block_batch"]
    assert B % Bb == 0, f"batch {B} must be divisible by block_batch {Bb}"
    grid_b = B // Bb
    o_pad = prep["fc_mat"].shape[1]

    weights = []
    for (T, R, S) in prep["layers"]:
        weights += [T, R, S]
    weights += [prep["pool_mat"], prep["fc_mat"], prep["fc_b"]]
    weight_bytes = sum(int(w.size) * w.dtype.itemsize for w in weights)
    x_block_bytes = Bb * H * WC * x2d.dtype.itemsize
    out_block_bytes = Bb * o_pad * 4

    def build_and_run(core_parallel, single_buffer):
        def w_spec(shape):
            nd = len(shape)
            kw = dict(pipeline_mode=pl.Buffered(1)) if single_buffer else {}
            # grid-invariant weight operand: constant block index, full-array block
            return pl.BlockSpec(shape, lambda *_: (0,) * nd, **kw)

        in_specs = [pl.BlockSpec((Bb, H, WC), lambda g: (g, 0, 0))]
        in_specs += [w_spec(w.shape) for w in weights]
        sem = (pltpu.CORE_PARALLEL,) if core_parallel else ("parallel",)
        fn = pl.pallas_call(
            _make_kernel(prep["compute_dtype"], Bb, H),
            out_shape=jax.ShapeDtypeStruct((grid_b, Bb, o_pad), jnp.float32),
            grid=(grid_b,),
            in_specs=in_specs,
            out_specs=pl.BlockSpec((1, Bb, o_pad), lambda g: (g, 0, 0)),
            compiler_params=pltpu.CompilerParams(
                dimension_semantics=sem,
                vmem_limit_bytes=_vmem_limit_bytes(
                    weight_bytes, x_block_bytes, out_block_bytes, single_buffer),
            ),
        )
        return jax.block_until_ready(fn(x2d, *weights))

    # Preferred config first (v7x dual-TC + single-buffered weights); the fallbacks keep the
    # kernel running on toolchains that reject CORE_PARALLEL or Buffered(1).
    configs = ((True, True), (False, True), (False, False))
    out = None
    for idx in range(prep.get("_cfg_idx", 0), len(configs)):
        try:
            out = build_and_run(*configs[idx])
            prep["_cfg_idx"] = idx
            break
        except Exception:
            if idx == len(configs) - 1:
                raise
    return out.reshape(B, o_pad)[:, :prep["out_ch"]]


def to_style_forward_nhwc(x_nhwc, prep):
    """Preferred entry: NHWC -> (B, H, W*C) is a pure reshape (no HBM transpose round trip)."""
    B, H, W, C = x_nhwc.shape
    return to_style_pallas(x_nhwc.reshape(B, H, W * C), prep)


def to_style_forward(x_nchw, prep):
    """PyTorch-parity entry (NCHW).  The permute below is an extra XLA HBM pass; callers that
    already hold NHWC activations should use to_style_forward_nhwc instead."""
    return to_style_forward_nhwc(jnp.transpose(x_nchw, (0, 2, 3, 1)), prep)


# ---------------------------------------------------------------------------
# Host-side construction of the folded conv / pool+fc operands
# ---------------------------------------------------------------------------
def _build_conv_mats(w_oihw, scale, shift, hin, win, block_batch):
    """Fold one k3/s2/p1 conv (+BN scale) into a stacked tap matrix T_cat (3*W*Ci, Wout*Co),
    block-diagonal stride-2 row-selection matrices R (3, Bb*Hout, Bb*Hin) and the shift S."""
    co, ci = w_oihw.shape[0], w_oihw.shape[1]
    hout, wout = hin // 2, win // 2
    t_cat = np.zeros((3 * win * ci, wout * co), np.float32)
    r_sel = np.zeros((3, hout, hin), np.float32)
    for kh in range(3):
        for oh in range(hout):
            h = 2 * oh + kh - 1
            if 0 <= h < hin:
                r_sel[kh, oh, h] = 1.0                        # zero padding == dropped taps
        base = kh * win * ci
        for kw in range(3):
            tap = (w_oihw[:, :, kh, kw] * scale[:, None]).T   # (ci, co), BN scale folded
            for ow in range(wout):
                wc = 2 * ow + kw - 1
                if 0 <= wc < win:
                    t_cat[base + wc * ci: base + (wc + 1) * ci,
                          ow * co:(ow + 1) * co] += tap
    eye = np.eye(block_batch, dtype=np.float32)
    r_bd = np.stack([np.kron(eye, r_sel[kh]) for kh in range(3)])   # block-diag over batch block
    s = np.tile(shift.astype(np.float32), wout)[None, :]            # (1, wout*C)
    return t_cat, r_bd, s


def prepare_pallas_operands(params, H, W, block_batch=2, compute_dtype=jnp.bfloat16):
    """Fold conv/BN/pool/fc parameters into MXU operands.  bf16 by default (f32 accumulation is
    done in-kernel); the 0/1 selection / pooling matrices are exact in bf16.

    TODO(synk): for realistic channel counts the dense T_cat is O((W*C)^2) and must be tiled over
    its output columns (extra grid axis) or replaced by the 9-tap pltpu.roll formulation; at very
    small C the sub-128 lane widths of layers 2/3 also leave MXU columns idle.
    """
    assert H % 8 == 0 and W % 8 == 0, "three stride-2 convs need H, W divisible by 8"
    C, O = params["in_ch"], params["out_ch"]
    layers = []
    hin, win = H, W
    for (w, b, gamma, beta, mean, var) in params["conv"]:
        scale = np.asarray(gamma) / np.sqrt(np.asarray(var) + EPS)
        shift = np.asarray(beta) + (np.asarray(b) - np.asarray(mean)) * scale
        t_cat, r_bd, s = _build_conv_mats(np.asarray(w), scale, shift, hin, win, block_batch)
        layers.append((jnp.asarray(t_cat, compute_dtype),    # heavy matmul operand
                       jnp.asarray(r_bd, compute_dtype),     # 0/1 selection (exact in bf16)
                       jnp.asarray(s, jnp.float32)))         # f32 epilogue shift
        hin, win = hin // 2, win // 2

    h3, w3 = hin, win
    pool = np.zeros((block_batch, block_batch * h3), np.float32)
    for bb in range(block_batch):
        pool[bb, bb * h3:(bb + 1) * h3] = 1.0                # per-batch row-sum selection

    fc_w, fc_b = params["fc"]
    o_pad = ((O + 127) // 128) * 128                         # lane-dense output store
    gain = math.sqrt(2.0)                                    # fused_lrelu gain, folded in
    wfc = np.asarray(fc_w) * (gain / math.sqrt(C) / (h3 * w3))   # EqualLinear scale + pool avg
    fcm = np.zeros((w3 * C, o_pad), np.float32)
    for wcol in range(w3):
        fcm[wcol * C:(wcol + 1) * C, :O] = wfc.T
    fcb = np.zeros((1, o_pad), np.float32)
    fcb[0, :O] = np.asarray(fc_b) * gain
    return {"layers": layers,
            "pool_mat": jnp.asarray(pool, compute_dtype),
            "fc_mat": jnp.asarray(fcm, compute_dtype),
            "fc_b": jnp.asarray(fcb),
            "out_ch": O,
            "block_batch": block_batch,
            "compute_dtype": compute_dtype}


# ---------------------------------------------------------------------------
# Deterministic synthetic parameters + pure-JAX reference
# ---------------------------------------------------------------------------
def init_params(key, in_ch, out_ch):
    convs = []
    for _ in range(3):
        key, kw_, kb, kg, kbe, km, kv = jax.random.split(key, 7)
        w = 0.1 * jax.random.normal(kw_, (in_ch, in_ch, 3, 3), jnp.float32)   # OIHW (torch)
        b = 0.1 * jax.random.normal(kb, (in_ch,), jnp.float32)
        gamma = 1.0 + 0.1 * jax.random.normal(kg, (in_ch,), jnp.float32)
        beta = 0.1 * jax.random.normal(kbe, (in_ch,), jnp.float32)
        mean = 0.05 * jax.random.normal(km, (in_ch,), jnp.float32)
        var = 1.0 + 0.1 * jnp.abs(jax.random.normal(kv, (in_ch,), jnp.float32))
        convs.append((w, b, gamma, beta, mean, var))
    key, kfw, kfb = jax.random.split(key, 3)
    fc_w = jax.random.normal(kfw, (out_ch, in_ch), jnp.float32)   # torch EqualLinear (out, in)
    fc_b = 0.1 * jax.random.normal(kfb, (out_ch,), jnp.float32)
    return {"conv": convs, "fc": (fc_w, fc_b), "in_ch": in_ch, "out_ch": out_ch}


def ref_forward(x_nchw, params):
    x = x_nchw.astype(jnp.float32)
    for (w, b, gamma, beta, mean, var) in params["conv"]:
        x = lax.conv_general_dilated(
            x, w, (2, 2), ((1, 1), (1, 1)),
            dimension_numbers=("NCHW", "OIHW", "NCHW"))
        x = x + b[None, :, None, None]
        x = (gamma[None, :, None, None] * (x - mean[None, :, None, None])
             / jnp.sqrt(var[None, :, None, None] + EPS) + beta[None, :, None, None])
        x = jnp.where(x > 0, x, LEAKY_SLOPE * x)
    pooled = x.mean(axis=(2, 3))
    fc_w, fc_b = params["fc"]
    z = pooled @ (fc_w * (1.0 / math.sqrt(fc_w.shape[1]))).T + fc_b[None, :]
    return jnp.where(z > 0, z, LEAKY_SLOPE * z) * math.sqrt(2.0)


if __name__ == "__main__":
    in_ch, out_ch = 4, 8
    B, H, W = 4, 16, 16
    Bb = 2                                                     # batch elements per grid step

    key = jax.random.PRNGKey(0)
    key, kx = jax.random.split(key)
    x = jax.random.normal(kx, (B, in_ch, H, W), jnp.float32)   # NCHW, like PyTorch

    params = init_params(key, in_ch, out_ch)
    ref = jax.block_until_ready(ref_forward(x, params))

    # Exact f32 validation run (tight tolerance) through the PyTorch-parity NCHW entry.
    prep_f32 = prepare_pallas_operands(params, H, W, block_batch=Bb, compute_dtype=jnp.float32)
    out_f32 = jax.block_until_ready(to_style_forward(x, prep_f32))
    assert out_f32.shape == (B, out_ch), out_f32.shape
    assert jnp.allclose(out_f32, ref, atol=1e-4, rtol=1e-4), float(jnp.max(jnp.abs(out_f32 - ref)))

    # Default bf16 MXU path (f32 accumulation + f32 epilogue) through the NHWC fast entry.
    prep_bf16 = prepare_pallas_operands(params, H, W, block_batch=Bb)
    x_nhwc = jnp.transpose(x, (0, 2, 3, 1))
    out_bf16 = jax.block_until_ready(to_style_forward_nhwc(x_nhwc, prep_bf16))
    assert out_bf16.shape == (B, out_ch), out_bf16.shape
    assert jnp.allclose(out_bf16, ref, atol=5e-2, rtol=5e-2), float(jnp.max(jnp.abs(out_bf16 - ref)))

    print("KERNEL_OK")
</pallas_src>

<mosaic_0001>
module attributes {stable_mosaic.version = 11 : i64} {
  func.func @kernel(%arg0: i32, %arg1: memref<2x16x64xf32, #tpu.memory_space<vmem>>, %arg2: memref<192x32xf32, #tpu.memory_space<vmem>>, %arg3: memref<3x16x32xf32, #tpu.memory_space<vmem>>, %arg4: memref<1x32xf32, #tpu.memory_space<vmem>>, %arg5: memref<96x16xf32, #tpu.memory_space<vmem>>, %arg6: memref<3x8x16xf32, #tpu.memory_space<vmem>>, %arg7: memref<1x16xf32, #tpu.memory_space<vmem>>, %arg8: memref<48x8xf32, #tpu.memory_space<vmem>>, %arg9: memref<3x4x8xf32, #tpu.memory_space<vmem>>, %arg10: memref<1x8xf32, #tpu.memory_space<vmem>>, %arg11: memref<2x4xf32, #tpu.memory_space<vmem>>, %arg12: memref<8x128xf32, #tpu.memory_space<vmem>>, %arg13: memref<1x128xf32, #tpu.memory_space<vmem>>, %arg14: memref<1x2x128xf32, #tpu.memory_space<vmem>>) attributes {dimension_semantics = [#tpu.dimension_semantics<core_parallel>], iteration_bounds = array<i64: 2>, scalar_prefetch = 0 : i64, scratch_operands = 0 : i64, tpu.core_type = #tpu.core_type<tc>, window_params = [{transform_indices = @transform_0, window_bounds = array<i64: 2, 16, 64>}, {pipeline_mode = #tpu.pipeline_mode<synchronous>, transform_indices = @transform_1, window_bounds = array<i64: 192, 32>}, {pipeline_mode = #tpu.pipeline_mode<synchronous>, transform_indices = @transform_2, window_bounds = array<i64: 3, 16, 32>}, {pipeline_mode = #tpu.pipeline_mode<synchronous>, transform_indices = @transform_3, window_bounds = array<i64: 1, 32>}, {pipeline_mode = #tpu.pipeline_mode<synchronous>, transform_indices = @transform_4, window_bounds = array<i64: 96, 16>}, {pipeline_mode = #tpu.pipeline_mode<synchronous>, transform_indices = @transform_5, window_bounds = array<i64: 3, 8, 16>}, {pipeline_mode = #tpu.pipeline_mode<synchronous>, transform_indices = @transform_6, window_bounds = array<i64: 1, 16>}, {pipeline_mode = #tpu.pipeline_mode<synchronous>, transform_indices = @transform_7, window_bounds = array<i64: 48, 8>}, {pipeline_mode = #tpu.pipeline_mode<synchronous>, transform_indices = @transform_8, window_bounds = array<i64: 3, 4, 8>}, {pipeline_mode = #tpu.pipeline_mode<synchronous>, transform_indices = @transform_9, window_bounds = array<i64: 1, 8>}, {pipeline_mode = #tpu.pipeline_mode<synchronous>, transform_indices = @transform_10, window_bounds = array<i64: 2, 4>}, {pipeline_mode = #tpu.pipeline_mode<synchronous>, transform_indices = @transform_11, window_bounds = array<i64: 8, 128>}, {pipeline_mode = #tpu.pipeline_mode<synchronous>, transform_indices = @transform_12, window_bounds = array<i64: 1, 128>}, {transform_indices = @transform_13, window_bounds = array<i64: 1, 2, 128>}]} {
    %c0 = arith.constant 0 : index
    %c0_0 = arith.constant 0 : index
    %c0_1 = arith.constant 0 : index
    %0 = vector.load %arg1[%c0, %c0_0, %c0_1] : memref<2x16x64xf32, #tpu.memory_space<vmem>>, vector<2x16x64xf32>
    %1 = vector.shape_cast %0 : vector<2x16x64xf32> to vector<32x64xf32>
    %c0_2 = arith.constant 0 : index
    %c0_3 = arith.constant 0 : index
    %c0_4 = arith.constant 0 : index
    %2 = vector.load %arg3[%c0_2, %c0_3, %c0_4] : memref<3x16x32xf32, #tpu.memory_space<vmem>>, vector<1x16x32xf32>
    %3 = vector.shape_cast %2 : vector<1x16x32xf32> to vector<16x32xf32>
    %cst = arith.constant dense<0.000000e+00> : vector<16x64xf32>
    %4 = tpu.matmul %3, %1, %cst {dimension_numbers = #tpu.dot_dimension_numbers<[1], [0], [0], [1], [0, 0, 1, 1], [], []>} : vector<16x32xf32>, vector<32x64xf32>, vector<16x64xf32> -> vector<16x64xf32>
    %c1 = arith.constant 1 : index
    %c0_5 = arith.constant 0 : index
    %c0_6 = arith.constant 0 : index
    %5 = vector.load %arg3[%c1, %c0_5, %c0_6] : memref<3x16x32xf32, #tpu.memory_space<vmem>>, vector<1x16x32xf32>
    %6 = vector.shape_cast %5 : vector<1x16x32xf32> to vector<16x32xf32>
    %cst_7 = arith.constant dense<0.000000e+00> : vector<16x64xf32>
    %7 = tpu.matmul %6, %1, %cst_7 {dimension_numbers = #tpu.dot_dimension_numbers<[1], [0], [0], [1], [0, 0, 1, 1], [], []>} : vector<16x32xf32>, vector<32x64xf32>, vector<16x64xf32> -> vector<16x64xf32>
    %c2 = arith.constant 2 : index
    %c0_8 = arith.constant 0 : index
    %c0_9 = arith.constant 0 : index
    %8 = vector.load %arg3[%c2, %c0_8, %c0_9] : memref<3x16x32xf32, #tpu.memory_space<vmem>>, vector<1x16x32xf32>
    %9 = vector.shape_cast %8 : vector<1x16x32xf32> to vector<16x32xf32>
    %cst_10 = arith.constant dense<0.000000e+00> : vector<16x64xf32>
    %10 = tpu.matmul %9, %1, %cst_10 {dimension_numbers = #tpu.dot_dimension_numbers<[1], [0], [0], [1], [0, 0, 1, 1], [], []>} : vector<16x32xf32>, vector<32x64xf32>, vector<16x64xf32> -> vector<16x64xf32>
    %11 = tpu.concatenate %4, %7, %10 in 1 : vector<16x64xf32>, vector<16x64xf32>, vector<16x64xf32> -> vector<16x192xf32>
    %c0_11 = arith.constant 0 : index
    %c0_12 = arith.constant 0 : index
    %12 = vector.load %arg2[%c0_11, %c0_12] : memref<192x32xf32, #tpu.memory_space<vmem>>, vector<192x32xf32>
    %cst_13 = arith.constant dense<0.000000e+00> : vector<16x32xf32>
    %13 = tpu.matmul %11, %12, %cst_13 {dimension_numbers = #tpu.dot_dimension_numbers<[1], [0], [0], [1], [0, 0, 1, 1], [], []>} : vector<16x192xf32>, vector<192x32xf32>, vector<16x32xf32> -> vector<16x32xf32>
    %c0_14 = arith.constant 0 : index
    %c0_15 = arith.constant 0 : index
    %14 = vector.load %arg4[%c0_14, %c0_15] : memref<1x32xf32, #tpu.memory_space<vmem>>, vector<1x32xf32>
    %15 = vector.broadcast %14 : vector<1x32xf32> to vector<16x32xf32>
    %16 = arith.addf %13, %15 : vector<16x32xf32>
    %cst_16 = arith.constant 0.000000e+00 : f32
    %17 = vector.broadcast %cst_16 : f32 to vector<16x32xf32>
    %18 = arith.cmpf ogt, %16, %17 : vector<16x32xf32>
    %cst_17 = arith.constant 2.000000e-01 : f32
    %19 = vector.broadcast %cst_17 : f32 to vector<16x32xf32>
    %20 = arith.mulf %19, %16 : vector<16x32xf32>
    %21 = arith.select %18, %16, %20 : vector<16x32xi1>, vector<16x32xf32>
    %c0_18 = arith.constant 0 : index
    %c0_19 = arith.constant 0 : index
    %c0_20 = arith.constant 0 : index
    %22 = vector.load %arg6[%c0_18, %c0_19, %c0_20] : memref<3x8x16xf32, #tpu.memory_space<vmem>>, vector<1x8x16xf32>
    %23 = vector.shape_cast %22 : vector<1x8x16xf32> to vector<8x16xf32>
    %cst_21 = arith.constant dense<0.000000e+00> : vector<8x32xf32>
    %24 = tpu.matmul %23, %21, %cst_21 {dimension_numbers = #tpu.dot_dimension_numbers<[1], [0], [0], [1], [0, 0, 1, 1], [], []>} : vector<8x16xf32>, vector<16x32xf32>, vector<8x32xf32> -> vector<8x32xf32>
    %c1_22 = arith.constant 1 : index
    %c0_23 = arith.constant 0 : index
    %c0_24 = arith.constant 0 : index
    %25 = vector.load %arg6[%c1_22, %c0_23, %c0_24] : memref<3x8x16xf32, #tpu.memory_space<vmem>>, vector<1x8x16xf32>
    %26 = vector.shape_cast %25 : vector<1x8x16xf32> to vector<8x16xf32>
    %cst_25 = arith.constant dense<0.000000e+00> : vector<8x32xf32>
    %27 = tpu.matmul %26, %21, %cst_25 {dimension_numbers = #tpu.dot_dimension_numbers<[1], [0], [0], [1], [0, 0, 1, 1], [], []>} : vector<8x16xf32>, vector<16x32xf32>, vector<8x32xf32> -> vector<8x32xf32>
    %c2_26 = arith.constant 2 : index
    %c0_27 = arith.constant 0 : index
    %c0_28 = arith.constant 0 : index
    %28 = vector.load %arg6[%c2_26, %c0_27, %c0_28] : memref<3x8x16xf32, #tpu.memory_space<vmem>>, vector<1x8x16xf32>
    %29 = vector.shape_cast %28 : vector<1x8x16xf32> to vector<8x16xf32>
    %cst_29 = arith.constant dense<0.000000e+00> : vector<8x32xf32>
    %30 = tpu.matmul %29, %21, %cst_29 {dimension_numbers = #tpu.dot_dimension_numbers<[1], [0], [0], [1], [0, 0, 1, 1], [], []>} : vector<8x16xf32>, vector<16x32xf32>, vector<8x32xf32> -> vector<8x32xf32>
    %31 = tpu.concatenate %24, %27, %30 in 1 : vector<8x32xf32>, vector<8x32xf32>, vector<8x32xf32> -> vector<8x96xf32>
    %c0_30 = arith.constant 0 : index
    %c0_31 = arith.constant 0 : index
    %32 = vector.load %arg5[%c0_30, %c0_31] : memref<96x16xf32, #tpu.memory_space<vmem>>, vector<96x16xf32>
    %cst_32 = arith.constant dense<0.000000e+00> : vector<8x16xf32>
    %33 = tpu.matmul %31, %32, %cst_32 {dimension_numbers = #tpu.dot_dimension_numbers<[1], [0], [0], [1], [0, 0, 1, 1], [], []>} : vector<8x96xf32>, vector<96x16xf32>, vector<8x16xf32> -> vector<8x16xf32>
    %c0_33 = arith.constant 0 : index
    %c0_34 = arith.constant 0 : index
    %34 = vector.load %arg7[%c0_33, %c0_34] : memref<1x16xf32, #tpu.memory_space<vmem>>, vector<1x16xf32>
    %35 = vector.broadcast %34 : vector<1x16xf32> to vector<8x16xf32>
    %36 = arith.addf %33, %35 : vector<8x16xf32>
    %cst_35 = arith.constant 0.000000e+00 : f32
    %37 = vector.broadcast %cst_35 : f32 to vector<8x16xf32>
    %38 = arith.cmpf ogt, %36, %37 : vector<8x16xf32>
    %cst_36 = arith.constant 2.000000e-01 : f32
    %39 = vector.broadcast %cst_36 : f32 to vector<8x16xf32>
    %40 = arith.mulf %39, %36 : vector<8x16xf32>
    %41 = arith.select %38, %36, %40 : vector<8x16xi1>, vector<8x16xf32>
    %c0_37 = arith.constant 0 : index
    %c0_38 = arith.constant 0 : index
    %c0_39 = arith.constant 0 : index
    %42 = vector.load %arg9[%c0_37, %c0_38, %c0_39] : memref<3x4x8xf32, #tpu.memory_space<vmem>>, vector<1x4x8xf32>
    %43 = vector.shape_cast %42 : vector<1x4x8xf32> to vector<4x8xf32>
    %cst_40 = arith.constant dense<0.000000e+00> : vector<4x16xf32>
    %44 = tpu.matmul %43, %41, %cst_40 {dimension_numbers = #tpu.dot_dimension_numbers<[1], [0], [0], [1], [0, 0, 1, 1], [], []>} : vector<4x8xf32>, vector<8x16xf32>, vector<4x16xf32> -> vector<4x16xf32>
    %c1_41 = arith.constant 1 : index
    %c0_42 = arith.constant 0 : index
    %c0_43 = arith.constant 0 : index
    %45 = vector.load %arg9[%c1_41, %c0_42, %c0_43] : memref<3x4x8xf32, #tpu.memory_space<vmem>>, vector<1x4x8xf32>
    %46 = vector.shape_cast %45 : vector<1x4x8xf32> to vector<4x8xf32>
    %cst_44 = arith.constant dense<0.000000e+00> : vector<4x16xf32>
    %47 = tpu.matmul %46, %41, %cst_44 {dimension_numbers = #tpu.dot_dimension_numbers<[1], [0], [0], [1], [0, 0, 1, 1], [], []>} : vector<4x8xf32>, vector<8x16xf32>, vector<4x16xf32> -> vector<4x16xf32>
    %c2_45 = arith.constant 2 : index
    %c0_46 = arith.constant 0 : index
    %c0_47 = arith.constant 0 : index
    %48 = vector.load %arg9[%c2_45, %c0_46, %c0_47] : memref<3x4x8xf32, #tpu.memory_space<vmem>>, vector<1x4x8xf32>
    %49 = vector.shape_cast %48 : vector<1x4x8xf32> to vector<4x8xf32>
    %cst_48 = arith.constant dense<0.000000e+00> : vector<4x16xf32>
    %50 = tpu.matmul %49, %41, %cst_48 {dimension_numbers = #tpu.dot_dimension_numbers<[1], [0], [0], [1], [0, 0, 1, 1], [], []>} : vector<4x8xf32>, vector<8x16xf32>, vector<4x16xf32> -> vector<4x16xf32>
    %51 = tpu.concatenate %44, %47, %50 in 1 : vector<4x16xf32>, vector<4x16xf32>, vector<4x16xf32> -> vector<4x48xf32>
    %c0_49 = arith.constant 0 : index
    %c0_50 = arith.constant 0 : index
    %52 = vector.load %arg8[%c0_49, %c0_50] : memref<48x8xf32, #tpu.memory_space<vmem>>, vector<48x8xf32>
    %cst_51 = arith.constant dense<0.000000e+00> : vector<4x8xf32>
    %53 = tpu.matmul %51, %52, %cst_51 {dimension_numbers = #tpu.dot_dimension_numbers<[1], [0], [0], [1], [0, 0, 1, 1], [], []>} : vector<4x48xf32>, vector<48x8xf32>, vector<4x8xf32> -> vector<4x8xf32>
    %c0_52 = arith.constant 0 : index
    %c0_53 = arith.constant 0 : index
    %54 = vector.load %arg10[%c0_52, %c0_53] : memref<1x8xf32, #tpu.memory_space<vmem>>, vector<1x8xf32>
    %55 = vector.broadcast %54 : vector<1x8xf32> to vector<4x8xf32>
    %56 = arith.addf %53, %55 : vector<4x8xf32>
    %cst_54 = arith.constant 0.000000e+00 : f32
    %57 = vector.broadcast %cst_54 : f32 to vector<4x8xf32>
    %58 = arith.cmpf ogt, %56, %57 : vector<4x8xf32>
    %cst_55 = arith.constant 2.000000e-01 : f32
    %59 = vector.broadcast %cst_55 : f32 to vector<4x8xf32>
    %60 = arith.mulf %59, %56 : vector<4x8xf32>
    %61 = arith.select %58, %56, %60 : vector<4x8xi1>, vector<4x8xf32>
    %c0_56 = arith.constant 0 : index
    %c0_57 = arith.constant 0 : index
    %62 = vector.load %arg11[%c0_56, %c0_57] : memref<2x4xf32, #tpu.memory_space<vmem>>, vector<2x4xf32>
    %cst_58 = arith.constant dense<0.000000e+00> : vector<2x8xf32>
    %63 = tpu.matmul %62, %61, %cst_58 {dimension_numbers = #tpu.dot_dimension_numbers<[1], [0], [0], [1], [0, 0, 1, 1], [], []>} : vector<2x4xf32>, vector<4x8xf32>, vector<2x8xf32> -> vector<2x8xf32>
    %c0_59 = arith.constant 0 : index
    %c0_60 = arith.constant 0 : index
    %64 = vector.load %arg12[%c0_59, %c0_60] : memref<8x128xf32, #tpu.memory_space<vmem>>, vector<8x128xf32>
    %cst_61 = arith.constant dense<0.000000e+00> : vector<2x128xf32>
    %65 = tpu.matmul %63, %64, %cst_61 {dimension_numbers = #tpu.dot_dimension_numbers<[1], [0], [0], [1], [0, 0, 1, 1], [], []>} : vector<2x8xf32>, vector<8x128xf32>, vector<2x128xf32> -> vector<2x128xf32>
    %c0_62 = arith.constant 0 : index
    %c0_63 = arith.constant 0 : index
    %66 = vector.load %arg13[%c0_62, %c0_63] : memref<1x128xf32, #tpu.memory_space<vmem>>, vector<1x128xf32>
    %67 = vector.broadcast %66 : vector<1x128xf32> to vector<2x128xf32>
    %68 = arith.addf %65, %67 : vector<2x128xf32>
    %cst_64 = arith.constant 0.000000e+00 : f32
    %69 = vector.broadcast %cst_64 : f32 to vector<2x128xf32>
    %70 = arith.cmpf ogt, %68, %69 : vector<2x128xf32>
    %cst_65 = arith.constant 2.000000e-01 : f32
    %71 = vector.broadcast %cst_65 : f32 to vector<2x128xf32>
    %72 = arith.mulf %71, %68 : vector<2x128xf32>
    %73 = arith.select %70, %68, %72 : vector<2x128xi1>, vector<2x128xf32>
    %c0_66 = arith.constant 0 : index
    %c0_67 = arith.constant 0 : index
    %c0_68 = arith.constant 0 : index
    %74 = vector.load %arg14[%c0_66, %c0_67, %c0_68] : memref<1x2x128xf32, #tpu.memory_space<vmem>>, vector<1x2x128xf32>
    %75 = vector.shape_cast %74 : vector<1x2x128xf32> to vector<2x128xf32>
    %76 = vector.shape_cast %73 : vector<2x128xf32> to vector<1x2x128xf32>
    tpu.vector_store %arg14[%c0_66, %c0_67, %c0_68], %76 {strides = array<i32>} : memref<1x2x128xf32, #tpu.memory_space<vmem>>, vector<1x2x128xf32>,
    return
  }
  func.func @transform_0(%arg0: i32) -> (i32, i32, i32) {
    %c0_i32 = arith.constant 0 : i32
    %c0_i32_0 = arith.constant 0 : i32
    %c0_i32_1 = arith.constant 0 : i32
    return %arg0, %c0_i32, %c0_i32_0 : i32, i32, i32
  }
  func.func @transform_1(%arg0: i32) -> (i32, i32) {
    %c0_i32 = arith.constant 0 : i32
    %c0_i32_0 = arith.constant 0 : i32
    %c0_i32_1 = arith.constant 0 : i32
    return %c0_i32, %c0_i32_0 : i32, i32
  }
  func.func @transform_2(%arg0: i32) -> (i32, i32, i32) {
    %c0_i32 = arith.constant 0 : i32
    %c0_i32_0 = arith.constant 0 : i32
    %c0_i32_1 = arith.constant 0 : i32
    %c0_i32_2 = arith.constant 0 : i32
    return %c0_i32, %c0_i32_0, %c0_i32_1 : i32, i32, i32
  }
  func.func @transform_3(%arg0: i32) -> (i32, i32) {
    %c0_i32 = arith.constant 0 : i32
    %c0_i32_0 = arith.constant 0 : i32
    %c0_i32_1 = arith.constant 0 : i32
    return %c0_i32, %c0_i32_0 : i32, i32
  }
  func.func @transform_4(%arg0: i32) -> (i32, i32) {
    %c0_i32 = arith.constant 0 : i32
    %c0_i32_0 = arith.constant 0 : i32
    %c0_i32_1 = arith.constant 0 : i32
    return %c0_i32, %c0_i32_0 : i32, i32
  }
  func.func @transform_5(%arg0: i32) -> (i32, i32, i32) {
    %c0_i32 = arith.constant 0 : i32
    %c0_i32_0 = arith.constant 0 : i32
    %c0_i32_1 = arith.constant 0 : i32
    %c0_i32_2 = arith.constant 0 : i32
    return %c0_i32, %c0_i32_0, %c0_i32_1 : i32, i32, i32
  }
  func.func @transform_6(%arg0: i32) -> (i32, i32) {
    %c0_i32 = arith.constant 0 : i32
    %c0_i32_0 = arith.constant 0 : i32
    %c0_i32_1 = arith.constant 0 : i32
    return %c0_i32, %c0_i32_0 : i32, i32
  }
  func.func @transform_7(%arg0: i32) -> (i32, i32) {
    %c0_i32 = arith.constant 0 : i32
    %c0_i32_0 = arith.constant 0 : i32
    %c0_i32_1 = arith.constant 0 : i32
    return %c0_i32, %c0_i32_0 : i32, i32
  }
  func.func @transform_8(%arg0: i32) -> (i32, i32, i32) {
    %c0_i32 = arith.constant 0 : i32
    %c0_i32_0 = arith.constant 0 : i32
    %c0_i32_1 = arith.constant 0 : i32
    %c0_i32_2 = arith.constant 0 : i32
    return %c0_i32, %c0_i32_0, %c0_i32_1 : i32, i32, i32
  }
  func.func @transform_9(%arg0: i32) -> (i32, i32) {
    %c0_i32 = arith.constant 0 : i32
    %c0_i32_0 = arith.constant 0 : i32
    %c0_i32_1 = arith.constant 0 : i32
    return %c0_i32, %c0_i32_0 : i32, i32
  }
  func.func @transform_10(%arg0: i32) -> (i32, i32) {
    %c0_i32 = arith.constant 0 : i32
    %c0_i32_0 = arith.constant 0 : i32
    %c0_i32_1 = arith.constant 0 : i32
    return %c0_i32, %c0_i32_0 : i32, i32
  }
  func.func @transform_11(%arg0: i32) -> (i32, i32) {
    %c0_i32 = arith.constant 0 : i32
    %c0_i32_0 = arith.constant 0 : i32
    %c0_i32_1 = arith.constant 0 : i32
    return %c0_i32, %c0_i32_0 : i32, i32
  }
  func.func @transform_12(%arg0: i32) -> (i32, i32) {
    %c0_i32 = arith.constant 0 : i32
    %c0_i32_0 = arith.constant 0 : i32
    %c0_i32_1 = arith.constant 0 : i32
    return %c0_i32, %c0_i32_0 : i32, i32
  }
  func.func @transform_13(%arg0: i32) -> (i32, i32, i32) {
    %c0_i32 = arith.constant 0 : i32
    %c0_i32_0 = arith.constant 0 : i32
    %c0_i32_1 = arith.constant 0 : i32
    return %arg0, %c0_i32, %c0_i32_0 : i32, i32, i32
  }
}

module attributes {stable_mosaic.version = 11 : i64} {
  func.func @kernel(%arg0: i32, %arg1: memref<2x16x64xf32, #tpu.memory_space<vmem>>, %arg2: memref<192x32xf32, #tpu.memory_space<vmem>>, %arg3: memref<3x16x32xf32, #tpu.memory_space<vmem>>, %arg4: memref<1x32xf32, #tpu.memory_space<vmem>>, %arg5: memref<96x16xf32, #tpu.memory_space<vmem>>, %arg6: memref<3x8x16xf32, #tpu.memory_space<vmem>>, %arg7: memref<1x16xf32, #tpu.memory_space<vmem>>, %arg8: memref<48x8xf32, #tpu.memory_space<vmem>>, %arg9: memref<3x4x8xf32, #tpu.memory_space<vmem>>, %arg10: memref<1x8xf32, #tpu.memory_space<vmem>>, %arg11: memref<2x4xf32, #tpu.memory_space<vmem>>, %arg12: memref<8x128xf32, #tpu.memory_space<vmem>>, %arg13: memref<1x128xf32, #tpu.memory_space<vmem>>, %arg14: memref<1x2x128xf32, #tpu.memory_space<vmem>>) attributes {dimension_semantics = [#tpu.dimension_semantics<parallel>], iteration_bounds = array<i64: 2>, scalar_prefetch = 0 : i64, scratch_operands = 0 : i64, tpu.core_type = #tpu.core_type<tc>, window_params = [{transform_indices = @transform_0, window_bounds = array<i64: 2, 16, 64>}, {pipeline_mode = #tpu.pipeline_mode<synchronous>, transform_indices = @transform_1, window_bounds = array<i64: 192, 32>}, {pipeline_mode = #tpu.pipeline_mode<synchronous>, transform_indices = @transform_2, window_bounds = array<i64: 3, 16, 32>}, {pipeline_mode = #tpu.pipeline_mode<synchronous>, transform_indices = @transform_3, window_bounds = array<i64: 1, 32>}, {pipeline_mode = #tpu.pipeline_mode<synchronous>, transform_indices = @transform_4, window_bounds = array<i64: 96, 16>}, {pipeline_mode = #tpu.pipeline_mode<synchronous>, transform_indices = @transform_5, window_bounds = array<i64: 3, 8, 16>}, {pipeline_mode = #tpu.pipeline_mode<synchronous>, transform_indices = @transform_6, window_bounds = array<i64: 1, 16>}, {pipeline_mode = #tpu.pipeline_mode<synchronous>, transform_indices = @transform_7, window_bounds = array<i64: 48, 8>}, {pipeline_mode = #tpu.pipeline_mode<synchronous>, transform_indices = @transform_8, window_bounds = array<i64: 3, 4, 8>}, {pipeline_mode = #tpu.pipeline_mode<synchronous>, transform_indices = @transform_9, window_bounds = array<i64: 1, 8>}, {pipeline_mode = #tpu.pipeline_mode<synchronous>, transform_indices = @transform_10, window_bounds = array<i64: 2, 4>}, {pipeline_mode = #tpu.pipeline_mode<synchronous>, transform_indices = @transform_11, window_bounds = array<i64: 8, 128>}, {pipeline_mode = #tpu.pipeline_mode<synchronous>, transform_indices = @transform_12, window_bounds = array<i64: 1, 128>}, {transform_indices = @transform_13, window_bounds = array<i64: 1, 2, 128>}]} {
    %c0 = arith.constant 0 : index
    %c0_0 = arith.constant 0 : index
    %c0_1 = arith.constant 0 : index
    %0 = vector.load %arg1[%c0, %c0_0, %c0_1] : memref<2x16x64xf32, #tpu.memory_space<vmem>>, vector<2x16x64xf32>
    %1 = vector.shape_cast %0 : vector<2x16x64xf32> to vector<32x64xf32>
    %c0_2 = arith.constant 0 : index
    %c0_3 = arith.constant 0 : index
    %c0_4 = arith.constant 0 : index
    %2 = vector.load %arg3[%c0_2, %c0_3, %c0_4] : memref<3x16x32xf32, #tpu.memory_space<vmem>>, vector<1x16x32xf32>
    %3 = vector.shape_cast %2 : vector<1x16x32xf32> to vector<16x32xf32>
    %cst = arith.constant dense<0.000000e+00> : vector<16x64xf32>
    %4 = tpu.matmul %3, %1, %cst {dimension_numbers = #tpu.dot_dimension_numbers<[1], [0], [0], [1], [0, 0, 1, 1], [], []>} : vector<16x32xf32>, vector<32x64xf32>, vector<16x64xf32> -> vector<16x64xf32>
    %c1 = arith.constant 1 : index
    %c0_5 = arith.constant 0 : index
    %c0_6 = arith.constant 0 : index
    %5 = vector.load %arg3[%c1, %c0_5, %c0_6] : memref<3x16x32xf32, #tpu.memory_space<vmem>>, vector<1x16x32xf32>
    %6 = vector.shape_cast %5 : vector<1x16x32xf32> to vector<16x32xf32>
    %cst_7 = arith.constant dense<0.000000e+00> : vector<16x64xf32>
    %7 = tpu.matmul %6, %1, %cst_7 {dimension_numbers = #tpu.dot_dimension_numbers<[1], [0], [0], [1], [0, 0, 1, 1], [], []>} : vector<16x32xf32>, vector<32x64xf32>, vector<16x64xf32> -> vector<16x64xf32>
    %c2 = arith.constant 2 : index
    %c0_8 = arith.constant 0 : index
    %c0_9 = arith.constant 0 : index
    %8 = vector.load %arg3[%c2, %c0_8, %c0_9] : memref<3x16x32xf32, #tpu.memory_space<vmem>>, vector<1x16x32xf32>
    %9 = vector.shape_cast %8 : vector<1x16x32xf32> to vector<16x32xf32>
    %cst_10 = arith.constant dense<0.000000e+00> : vector<16x64xf32>
    %10 = tpu.matmul %9, %1, %cst_10 {dimension_numbers = #tpu.dot_dimension_numbers<[1], [0], [0], [1], [0, 0, 1, 1], [], []>} : vector<16x32xf32>, vector<32x64xf32>, vector<16x64xf32> -> vector<16x64xf32>
    %11 = tpu.concatenate %4, %7, %10 in 1 : vector<16x64xf32>, vector<16x64xf32>, vector<16x64xf32> -> vector<16x192xf32>
    %c0_11 = arith.constant 0 : index
    %c0_12 = arith.constant 0 : index
    %12 = vector.load %arg2[%c0_11, %c0_12] : memref<192x32xf32, #tpu.memory_space<vmem>>, vector<192x32xf32>
    %cst_13 = arith.constant dense<0.000000e+00> : vector<16x32xf32>
    %13 = tpu.matmul %11, %12, %cst_13 {dimension_numbers = #tpu.dot_dimension_numbers<[1], [0], [0], [1], [0, 0, 1, 1], [], []>} : vector<16x192xf32>, vector<192x32xf32>, vector<16x32xf32> -> vector<16x32xf32>
    %c0_14 = arith.constant 0 : index
    %c0_15 = arith.constant 0 : index
    %14 = vector.load %arg4[%c0_14, %c0_15] : memref<1x32xf32, #tpu.memory_space<vmem>>, vector<1x32xf32>
    %15 = vector.broadcast %14 : vector<1x32xf32> to vector<16x32xf32>
    %16 = arith.addf %13, %15 : vector<16x32xf32>
    %cst_16 = arith.constant 0.000000e+00 : f32
    %17 = vector.broadcast %cst_16 : f32 to vector<16x32xf32>
    %18 = arith.cmpf ogt, %16, %17 : vector<16x32xf32>
    %cst_17 = arith.constant 2.000000e-01 : f32
    %19 = vector.broadcast %cst_17 : f32 to vector<16x32xf32>
    %20 = arith.mulf %19, %16 : vector<16x32xf32>
    %21 = arith.select %18, %16, %20 : vector<16x32xi1>, vector<16x32xf32>
    %c0_18 = arith.constant 0 : index
    %c0_19 = arith.constant 0 : index
    %c0_20 = arith.constant 0 : index
    %22 = vector.load %arg6[%c0_18, %c0_19, %c0_20] : memref<3x8x16xf32, #tpu.memory_space<vmem>>, vector<1x8x16xf32>
    %23 = vector.shape_cast %22 : vector<1x8x16xf32> to vector<8x16xf32>
    %cst_21 = arith.constant dense<0.000000e+00> : vector<8x32xf32>
    %24 = tpu.matmul %23, %21, %cst_21 {dimension_numbers = #tpu.dot_dimension_numbers<[1], [0], [0], [1], [0, 0, 1, 1], [], []>} : vector<8x16xf32>, vector<16x32xf32>, vector<8x32xf32> -> vector<8x32xf32>
    %c1_22 = arith.constant 1 : index
    %c0_23 = arith.constant 0 : index
    %c0_24 = arith.constant 0 : index
    %25 = vector.load %arg6[%c1_22, %c0_23, %c0_24] : memref<3x8x16xf32, #tpu.memory_space<vmem>>, vector<1x8x16xf32>
    %26 = vector.shape_cast %25 : vector<1x8x16xf32> to vector<8x16xf32>
    %cst_25 = arith.constant dense<0.000000e+00> : vector<8x32xf32>
    %27 = tpu.matmul %26, %21, %cst_25 {dimension_numbers = #tpu.dot_dimension_numbers<[1], [0], [0], [1], [0, 0, 1, 1], [], []>} : vector<8x16xf32>, vector<16x32xf32>, vector<8x32xf32> -> vector<8x32xf32>
    %c2_26 = arith.constant 2 : index
    %c0_27 = arith.constant 0 : index
    %c0_28 = arith.constant 0 : index
    %28 = vector.load %arg6[%c2_26, %c0_27, %c0_28] : memref<3x8x16xf32, #tpu.memory_space<vmem>>, vector<1x8x16xf32>
    %29 = vector.shape_cast %28 : vector<1x8x16xf32> to vector<8x16xf32>
    %cst_29 = arith.constant dense<0.000000e+00> : vector<8x32xf32>
    %30 = tpu.matmul %29, %21, %cst_29 {dimension_numbers = #tpu.dot_dimension_numbers<[1], [0], [0], [1], [0, 0, 1, 1], [], []>} : vector<8x16xf32>, vector<16x32xf32>, vector<8x32xf32> -> vector<8x32xf32>
    %31 = tpu.concatenate %24, %27, %30 in 1 : vector<8x32xf32>, vector<8x32xf32>, vector<8x32xf32> -> vector<8x96xf32>
    %c0_30 = arith.constant 0 : index
    %c0_31 = arith.constant 0 : index
    %32 = vector.load %arg5[%c0_30, %c0_31] : memref<96x16xf32, #tpu.memory_space<vmem>>, vector<96x16xf32>
    %cst_32 = arith.constant dense<0.000000e+00> : vector<8x16xf32>
    %33 = tpu.matmul %31, %32, %cst_32 {dimension_numbers = #tpu.dot_dimension_numbers<[1], [0], [0], [1], [0, 0, 1, 1], [], []>} : vector<8x96xf32>, vector<96x16xf32>, vector<8x16xf32> -> vector<8x16xf32>
    %c0_33 = arith.constant 0 : index
    %c0_34 = arith.constant 0 : index
    %34 = vector.load %arg7[%c0_33, %c0_34] : memref<1x16xf32, #tpu.memory_space<vmem>>, vector<1x16xf32>
    %35 = vector.broadcast %34 : vector<1x16xf32> to vector<8x16xf32>
    %36 = arith.addf %33, %35 : vector<8x16xf32>
    %cst_35 = arith.constant 0.000000e+00 : f32
    %37 = vector.broadcast %cst_35 : f32 to vector<8x16xf32>
    %38 = arith.cmpf ogt, %36, %37 : vector<8x16xf32>
    %cst_36 = arith.constant 2.000000e-01 : f32
    %39 = vector.broadcast %cst_36 : f32 to vector<8x16xf32>
    %40 = arith.mulf %39, %36 : vector<8x16xf32>
    %41 = arith.select %38, %36, %40 : vector<8x16xi1>, vector<8x16xf32>
    %c0_37 = arith.constant 0 : index
    %c0_38 = arith.constant 0 : index
    %c0_39 = arith.constant 0 : index
    %42 = vector.load %arg9[%c0_37, %c0_38, %c0_39] : memref<3x4x8xf32, #tpu.memory_space<vmem>>, vector<1x4x8xf32>
    %43 = vector.shape_cast %42 : vector<1x4x8xf32> to vector<4x8xf32>
    %cst_40 = arith.constant dense<0.000000e+00> : vector<4x16xf32>
    %44 = tpu.matmul %43, %41, %cst_40 {dimension_numbers = #tpu.dot_dimension_numbers<[1], [0], [0], [1], [0, 0, 1, 1], [], []>} : vector<4x8xf32>, vector<8x16xf32>, vector<4x16xf32> -> vector<4x16xf32>
    %c1_41 = arith.constant 1 : index
    %c0_42 = arith.constant 0 : index
    %c0_43 = arith.constant 0 : index
    %45 = vector.load %arg9[%c1_41, %c0_42, %c0_43] : memref<3x4x8xf32, #tpu.memory_space<vmem>>, vector<1x4x8xf32>
    %46 = vector.shape_cast %45 : vector<1x4x8xf32> to vector<4x8xf32>
    %cst_44 = arith.constant dense<0.000000e+00> : vector<4x16xf32>
    %47 = tpu.matmul %46, %41, %cst_44 {dimension_numbers = #tpu.dot_dimension_numbers<[1], [0], [0], [1], [0, 0, 1, 1], [], []>} : vector<4x8xf32>, vector<8x16xf32>, vector<4x16xf32> -> vector<4x16xf32>
    %c2_45 = arith.constant 2 : index
    %c0_46 = arith.constant 0 : index
    %c0_47 = arith.constant 0 : index
    %48 = vector.load %arg9[%c2_45, %c0_46, %c0_47] : memref<3x4x8xf32, #tpu.memory_space<vmem>>, vector<1x4x8xf32>
    %49 = vector.shape_cast %48 : vector<1x4x8xf32> to vector<4x8xf32>
    %cst_48 = arith.constant dense<0.000000e+00> : vector<4x16xf32>
    %50 = tpu.matmul %49, %41, %cst_48 {dimension_numbers = #tpu.dot_dimension_numbers<[1], [0], [0], [1], [0, 0, 1, 1], [], []>} : vector<4x8xf32>, vector<8x16xf32>, vector<4x16xf32> -> vector<4x16xf32>
    %51 = tpu.concatenate %44, %47, %50 in 1 : vector<4x16xf32>, vector<4x16xf32>, vector<4x16xf32> -> vector<4x48xf32>
    %c0_49 = arith.constant 0 : index
    %c0_50 = arith.constant 0 : index
    %52 = vector.load %arg8[%c0_49, %c0_50] : memref<48x8xf32, #tpu.memory_space<vmem>>, vector<48x8xf32>
    %cst_51 = arith.constant dense<0.000000e+00> : vector<4x8xf32>
    %53 = tpu.matmul %51, %52, %cst_51 {dimension_numbers = #tpu.dot_dimension_numbers<[1], [0], [0], [1], [0, 0, 1, 1], [], []>} : vector<4x48xf32>, vector<48x8xf32>, vector<4x8xf32> -> vector<4x8xf32>
    %c0_52 = arith.constant 0 : index
    %c0_53 = arith.constant 0 : index
    %54 = vector.load %arg10[%c0_52, %c0_53] : memref<1x8xf32, #tpu.memory_space<vmem>>, vector<1x8xf32>
    %55 = vector.broadcast %54 : vector<1x8xf32> to vector<4x8xf32>
    %56 = arith.addf %53, %55 : vector<4x8xf32>
    %cst_54 = arith.constant 0.000000e+00 : f32
    %57 = vector.broadcast %cst_54 : f32 to vector<4x8xf32>
    %58 = arith.cmpf ogt, %56, %57 : vector<4x8xf32>
    %cst_55 = arith.constant 2.000000e-01 : f32
    %59 = vector.broadcast %cst_55 : f32 to vector<4x8xf32>
    %60 = arith.mulf %59, %56 : vector<4x8xf32>
    %61 = arith.select %58, %56, %60 : vector<4x8xi1>, vector<4x8xf32>
    %c0_56 = arith.constant 0 : index
    %c0_57 = arith.constant 0 : index
    %62 = vector.load %arg11[%c0_56, %c0_57] : memref<2x4xf32, #tpu.memory_space<vmem>>, vector<2x4xf32>
    %cst_58 = arith.constant dense<0.000000e+00> : vector<2x8xf32>
    %63 = tpu.matmul %62, %61, %cst_58 {dimension_numbers = #tpu.dot_dimension_numbers<[1], [0], [0], [1], [0, 0, 1, 1], [], []>} : vector<2x4xf32>, vector<4x8xf32>, vector<2x8xf32> -> vector<2x8xf32>
    %c0_59 = arith.constant 0 : index
    %c0_60 = arith.constant 0 : index
    %64 = vector.load %arg12[%c0_59, %c0_60] : memref<8x128xf32, #tpu.memory_space<vmem>>, vector<8x128xf32>
    %cst_61 = arith.constant dense<0.000000e+00> : vector<2x128xf32>
    %65 = tpu.matmul %63, %64, %cst_61 {dimension_numbers = #tpu.dot_dimension_numbers<[1], [0], [0], [1], [0, 0, 1, 1], [], []>} : vector<2x8xf32>, vector<8x128xf32>, vector<2x128xf32> -> vector<2x128xf32>
    %c0_62 = arith.constant 0 : index
    %c0_63 = arith.constant 0 : index
    %66 = vector.load %arg13[%c0_62, %c0_63] : memref<1x128xf32, #tpu.memory_space<vmem>>, vector<1x128xf32>
    %67 = vector.broadcast %66 : vector<1x128xf32> to vector<2x128xf32>
    %68 = arith.addf %65, %67 : vector<2x128xf32>
    %cst_64 = arith.constant 0.000000e+00 : f32
    %69 = vector.broadcast %cst_64 : f32 to vector<2x128xf32>
    %70 = arith.cmpf ogt, %68, %69 : vector<2x128xf32>
    %cst_65 = arith.constant 2.000000e-01 : f32
    %71 = vector.broadcast %cst_65 : f32 to vector<2x128xf32>
    %72 = arith.mulf %71, %68 : vector<2x128xf32>
    %73 = arith.select %70, %68, %72 : vector<2x128xi1>, vector<2x128xf32>
    %c0_66 = arith.constant 0 : index
    %c0_67 = arith.constant 0 : index
    %c0_68 = arith.constant 0 : index
    %74 = vector.load %arg14[%c0_66, %c0_67, %c0_68] : memref<1x2x128xf32, #tpu.memory_space<vmem>>, vector<1x2x128xf32>
    %75 = vector.shape_cast %74 : vector<1x2x128xf32> to vector<2x128xf32>
    %76 = vector.shape_cast %73 : vector<2x128xf32> to vector<1x2x128xf32>
    tpu.vector_store %arg14[%c0_66, %c0_67, %c0_68], %76 {strides = array<i32>} : memref<1x2x128xf32, #tpu.memory_space<vmem>>, vector<1x2x128xf32>,
    return
  }
  func.func @transform_0(%arg0: i32) -> (i32, i32, i32) {
    %c0_i32 = arith.constant 0 : i32
    %c0_i32_0 = arith.constant 0 : i32
    %c0_i32_1 = arith.constant 0 : i32
    return %arg0, %c0_i32, %c0_i32_0 : i32, i32, i32
  }
  func.func @transform_1(%arg0: i32) -> (i32, i32) {
    %c0_i32 = arith.constant 0 : i32
    %c0_i32_0 = arith.constant 0 : i32
    %c0_i32_1 = arith.constant 0 : i32
    return %c0_i32, %c0_i32_0 : i32, i32
  }
  func.func @transform_2(%arg0: i32) -> (i32, i32, i32) {
    %c0_i32 = arith.constant 0 : i32
    %c0_i32_0 = arith.constant 0 : i32
    %c0_i32_1 = arith.constant 0 : i32
    %c0_i32_2 = arith.constant 0 : i32
    return %c0_i32, %c0_i32_0, %c0_i32_1 : i32, i32, i32
  }
  func.func @transform_3(%arg0: i32) -> (i32, i32) {
    %c0_i32 = arith.constant 0 : i32
    %c0_i32_0 = arith.constant 0 : i32
    %c0_i32_1 = arith.constant 0 : i32
    return %c0_i32, %c0_i32_0 : i32, i32
  }
  func.func @transform_4(%arg0: i32) -> (i32, i32) {
    %c0_i32 = arith.constant 0 : i32
    %c0_i32_0 = arith.constant 0 : i32
    %c0_i32_1 = arith.constant 0 : i32
    return %c0_i32, %c0_i32_0 : i32, i32
  }
  func.func @transform_5(%arg0: i32) -> (i32, i32, i32) {
    %c0_i32 = arith.constant 0 : i32
    %c0_i32_0 = arith.constant 0 : i32
    %c0_i32_1 = arith.constant 0 : i32
    %c0_i32_2 = arith.constant 0 : i32
    return %c0_i32, %c0_i32_0, %c0_i32_1 : i32, i32, i32
  }
  func.func @transform_6(%arg0: i32) -> (i32, i32) {
    %c0_i32 = arith.constant 0 : i32
    %c0_i32_0 = arith.constant 0 : i32
    %c0_i32_1 = arith.constant 0 : i32
    return %c0_i32, %c0_i32_0 : i32, i32
  }
  func.func @transform_7(%arg0: i32) -> (i32, i32) {
    %c0_i32 = arith.constant 0 : i32
    %c0_i32_0 = arith.constant 0 : i32
    %c0_i32_1 = arith.constant 0 : i32
    return %c0_i32, %c0_i32_0 : i32, i32
  }
  func.func @transform_8(%arg0: i32) -> (i32, i32, i32) {
    %c0_i32 = arith.constant 0 : i32
    %c0_i32_0 = arith.constant 0 : i32
    %c0_i32_1 = arith.constant 0 : i32
    %c0_i32_2 = arith.constant 0 : i32
    return %c0_i32, %c0_i32_0, %c0_i32_1 : i32, i32, i32
  }
  func.func @transform_9(%arg0: i32) -> (i32, i32) {
    %c0_i32 = arith.constant 0 : i32
    %c0_i32_0 = arith.constant 0 : i32
    %c0_i32_1 = arith.constant 0 : i32
    return %c0_i32, %c0_i32_0 : i32, i32
  }
  func.func @transform_10(%arg0: i32) -> (i32, i32) {
    %c0_i32 = arith.constant 0 : i32
    %c0_i32_0 = arith.constant 0 : i32
    %c0_i32_1 = arith.constant 0 : i32
    return %c0_i32, %c0_i32_0 : i32, i32
  }
  func.func @transform_11(%arg0: i32) -> (i32, i32) {
    %c0_i32 = arith.constant 0 : i32
    %c0_i32_0 = arith.constant 0 : i32
    %c0_i32_1 = arith.constant 0 : i32
    return %c0_i32, %c0_i32_0 : i32, i32
  }
  func.func @transform_12(%arg0: i32) -> (i32, i32) {
    %c0_i32 = arith.constant 0 : i32
    %c0_i32_0 = arith.constant 0 : i32
    %c0_i32_1 = arith.constant 0 : i32
    return %c0_i32, %c0_i32_0 : i32, i32
  }
  func.func @transform_13(%arg0: i32) -> (i32, i32, i32) {
    %c0_i32 = arith.constant 0 : i32
    %c0_i32_0 = arith.constant 0 : i32
    %c0_i32_1 = arith.constant 0 : i32
    return %arg0, %c0_i32, %c0_i32_0 : i32, i32, i32
  }
}

module attributes {stable_mosaic.version = 11 : i64} {
  func.func @kernel(%arg0: i32, %arg1: memref<2x16x64xf32, #tpu.memory_space<vmem>>, %arg2: memref<192x32xf32, #tpu.memory_space<vmem>>, %arg3: memref<3x16x32xf32, #tpu.memory_space<vmem>>, %arg4: memref<1x32xf32, #tpu.memory_space<vmem>>, %arg5: memref<96x16xf32, #tpu.memory_space<vmem>>, %arg6: memref<3x8x16xf32, #tpu.memory_space<vmem>>, %arg7: memref<1x16xf32, #tpu.memory_space<vmem>>, %arg8: memref<48x8xf32, #tpu.memory_space<vmem>>, %arg9: memref<3x4x8xf32, #tpu.memory_space<vmem>>, %arg10: memref<1x8xf32, #tpu.memory_space<vmem>>, %arg11: memref<2x4xf32, #tpu.memory_space<vmem>>, %arg12: memref<8x128xf32, #tpu.memory_space<vmem>>, %arg13: memref<1x128xf32, #tpu.memory_space<vmem>>, %arg14: memref<1x2x128xf32, #tpu.memory_space<vmem>>) attributes {dimension_semantics = [#tpu.dimension_semantics<parallel>], iteration_bounds = array<i64: 2>, scalar_prefetch = 0 : i64, scratch_operands = 0 : i64, tpu.core_type = #tpu.core_type<tc>, window_params = [{transform_indices = @transform_0, window_bounds = array<i64: 2, 16, 64>}, {pipeline_mode = #tpu.pipeline_mode<synchronous>, transform_indices = @transform_1, window_bounds = array<i64: 192, 32>}, {pipeline_mode = #tpu.pipeline_mode<synchronous>, transform_indices = @transform_2, window_bounds = array<i64: 3, 16, 32>}, {pipeline_mode = #tpu.pipeline_mode<synchronous>, transform_indices = @transform_3, window_bounds = array<i64: 1, 32>}, {pipeline_mode = #tpu.pipeline_mode<synchronous>, transform_indices = @transform_4, window_bounds = array<i64: 96, 16>}, {pipeline_mode = #tpu.pipeline_mode<synchronous>, transform_indices = @transform_5, window_bounds = array<i64: 3, 8, 16>}, {pipeline_mode = #tpu.pipeline_mode<synchronous>, transform_indices = @transform_6, window_bounds = array<i64: 1, 16>}, {pipeline_mode = #tpu.pipeline_mode<synchronous>, transform_indices = @transform_7, window_bounds = array<i64: 48, 8>}, {pipeline_mode = #tpu.pipeline_mode<synchronous>, transform_indices = @transform_8, window_bounds = array<i64: 3, 4, 8>}, {pipeline_mode = #tpu.pipeline_mode<synchronous>, transform_indices = @transform_9, window_bounds = array<i64: 1, 8>}, {pipeline_mode = #tpu.pipeline_mode<synchronous>, transform_indices = @transform_10, window_bounds = array<i64: 2, 4>}, {pipeline_mode = #tpu.pipeline_mode<synchronous>, transform_indices = @transform_11, window_bounds = array<i64: 8, 128>}, {pipeline_mode = #tpu.pipeline_mode<synchronous>, transform_indices = @transform_12, window_bounds = array<i64: 1, 128>}, {transform_indices = @transform_13, window_bounds = array<i64: 1, 2, 128>}]} {
    %c0 = arith.constant 0 : index
    %c0_0 = arith.constant 0 : index
    %c0_1 = arith.constant 0 : index
    %0 = vector.load %arg1[%c0, %c0_0, %c0_1] : memref<2x16x64xf32, #tpu.memory_space<vmem>>, vector<2x16x64xf32>
    %1 = vector.shape_cast %0 : vector<2x16x64xf32> to vector<32x64xf32>
    %c0_2 = arith.constant 0 : index
    %c0_3 = arith.constant 0 : index
    %c0_4 = arith.constant 0 : index
    %2 = vector.load %arg3[%c0_2, %c0_3, %c0_4] : memref<3x16x32xf32, #tpu.memory_space<vmem>>, vector<1x16x32xf32>
    %3 = vector.shape_cast %2 : vector<1x16x32xf32> to vector<16x32xf32>
    %cst = arith.constant dense<0.000000e+00> : vector<16x64xf32>
    %4 = tpu.matmul %3, %1, %cst {dimension_numbers = #tpu.dot_dimension_numbers<[1], [0], [0], [1], [0, 0, 1, 1], [], []>} : vector<16x32xf32>, vector<32x64xf32>, vector<16x64xf32> -> vector<16x64xf32>
    %c1 = arith.constant 1 : index
    %c0_5 = arith.constant 0 : index
    %c0_6 = arith.constant 0 : index
    %5 = vector.load %arg3[%c1, %c0_5, %c0_6] : memref<3x16x32xf32, #tpu.memory_space<vmem>>, vector<1x16x32xf32>
    %6 = vector.shape_cast %5 : vector<1x16x32xf32> to vector<16x32xf32>
    %cst_7 = arith.constant dense<0.000000e+00> : vector<16x64xf32>
    %7 = tpu.matmul %6, %1, %cst_7 {dimension_numbers = #tpu.dot_dimension_numbers<[1], [0], [0], [1], [0, 0, 1, 1], [], []>} : vector<16x32xf32>, vector<32x64xf32>, vector<16x64xf32> -> vector<16x64xf32>
    %c2 = arith.constant 2 : index
    %c0_8 = arith.constant 0 : index
    %c0_9 = arith.constant 0 : index
    %8 = vector.load %arg3[%c2, %c0_8, %c0_9] : memref<3x16x32xf32, #tpu.memory_space<vmem>>, vector<1x16x32xf32>
    %9 = vector.shape_cast %8 : vector<1x16x32xf32> to vector<16x32xf32>
    %cst_10 = arith.constant dense<0.000000e+00> : vector<16x64xf32>
    %10 = tpu.matmul %9, %1, %cst_10 {dimension_numbers = #tpu.dot_dimension_numbers<[1], [0], [0], [1], [0, 0, 1, 1], [], []>} : vector<16x32xf32>, vector<32x64xf32>, vector<16x64xf32> -> vector<16x64xf32>
    %11 = tpu.concatenate %4, %7, %10 in 1 : vector<16x64xf32>, vector<16x64xf32>, vector<16x64xf32> -> vector<16x192xf32>
    %c0_11 = arith.constant 0 : index
    %c0_12 = arith.constant 0 : index
    %12 = vector.load %arg2[%c0_11, %c0_12] : memref<192x32xf32, #tpu.memory_space<vmem>>, vector<192x32xf32>
    %cst_13 = arith.constant dense<0.000000e+00> : vector<16x32xf32>
    %13 = tpu.matmul %11, %12, %cst_13 {dimension_numbers = #tpu.dot_dimension_numbers<[1], [0], [0], [1], [0, 0, 1, 1], [], []>} : vector<16x192xf32>, vector<192x32xf32>, vector<16x32xf32> -> vector<16x32xf32>
    %c0_14 = arith.constant 0 : index
    %c0_15 = arith.constant 0 : index
    %14 = vector.load %arg4[%c0_14, %c0_15] : memref<1x32xf32, #tpu.memory_space<vmem>>, vector<1x32xf32>
    %15 = vector.broadcast %14 : vector<1x32xf32> to vector<16x32xf32>
    %16 = arith.addf %13, %15 : vector<16x32xf32>
    %cst_16 = arith.constant 0.000000e+00 : f32
    %17 = vector.broadcast %cst_16 : f32 to vector<16x32xf32>
    %18 = arith.cmpf ogt, %16, %17 : vector<16x32xf32>
    %cst_17 = arith.constant 2.000000e-01 : f32
    %19 = vector.broadcast %cst_17 : f32 to vector<16x32xf32>
    %20 = arith.mulf %19, %16 : vector<16x32xf32>
    %21 = arith.select %18, %16, %20 : vector<16x32xi1>, vector<16x32xf32>
    %c0_18 = arith.constant 0 : index
    %c0_19 = arith.constant 0 : index
    %c0_20 = arith.constant 0 : index
    %22 = vector.load %arg6[%c0_18, %c0_19, %c0_20] : memref<3x8x16xf32, #tpu.memory_space<vmem>>, vector<1x8x16xf32>
    %23 = vector.shape_cast %22 : vector<1x8x16xf32> to vector<8x16xf32>
    %cst_21 = arith.constant dense<0.000000e+00> : vector<8x32xf32>
    %24 = tpu.matmul %23, %21, %cst_21 {dimension_numbers = #tpu.dot_dimension_numbers<[1], [0], [0], [1], [0, 0, 1, 1], [], []>} : vector<8x16xf32>, vector<16x32xf32>, vector<8x32xf32> -> vector<8x32xf32>
    %c1_22 = arith.constant 1 : index
    %c0_23 = arith.constant 0 : index
    %c0_24 = arith.constant 0 : index
    %25 = vector.load %arg6[%c1_22, %c0_23, %c0_24] : memref<3x8x16xf32, #tpu.memory_space<vmem>>, vector<1x8x16xf32>
    %26 = vector.shape_cast %25 : vector<1x8x16xf32> to vector<8x16xf32>
    %cst_25 = arith.constant dense<0.000000e+00> : vector<8x32xf32>
    %27 = tpu.matmul %26, %21, %cst_25 {dimension_numbers = #tpu.dot_dimension_numbers<[1], [0], [0], [1], [0, 0, 1, 1], [], []>} : vector<8x16xf32>, vector<16x32xf32>, vector<8x32xf32> -> vector<8x32xf32>
    %c2_26 = arith.constant 2 : index
    %c0_27 = arith.constant 0 : index
    %c0_28 = arith.constant 0 : index
    %28 = vector.load %arg6[%c2_26, %c0_27, %c0_28] : memref<3x8x16xf32, #tpu.memory_space<vmem>>, vector<1x8x16xf32>
    %29 = vector.shape_cast %28 : vector<1x8x16xf32> to vector<8x16xf32>
    %cst_29 = arith.constant dense<0.000000e+00> : vector<8x32xf32>
    %30 = tpu.matmul %29, %21, %cst_29 {dimension_numbers = #tpu.dot_dimension_numbers<[1], [0], [0], [1], [0, 0, 1, 1], [], []>} : vector<8x16xf32>, vector<16x32xf32>, vector<8x32xf32> -> vector<8x32xf32>
    %31 = tpu.concatenate %24, %27, %30 in 1 : vector<8x32xf32>, vector<8x32xf32>, vector<8x32xf32> -> vector<8x96xf32>
    %c0_30 = arith.constant 0 : index
    %c0_31 = arith.constant 0 : index
    %32 = vector.load %arg5[%c0_30, %c0_31] : memref<96x16xf32, #tpu.memory_space<vmem>>, vector<96x16xf32>
    %cst_32 = arith.constant dense<0.000000e+00> : vector<8x16xf32>
    %33 = tpu.matmul %31, %32, %cst_32 {dimension_numbers = #tpu.dot_dimension_numbers<[1], [0], [0], [1], [0, 0, 1, 1], [], []>} : vector<8x96xf32>, vector<96x16xf32>, vector<8x16xf32> -> vector<8x16xf32>
    %c0_33 = arith.constant 0 : index
    %c0_34 = arith.constant 0 : index
    %34 = vector.load %arg7[%c0_33, %c0_34] : memref<1x16xf32, #tpu.memory_space<vmem>>, vector<1x16xf32>
    %35 = vector.broadcast %34 : vector<1x16xf32> to vector<8x16xf32>
    %36 = arith.addf %33, %35 : vector<8x16xf32>
    %cst_35 = arith.constant 0.000000e+00 : f32
    %37 = vector.broadcast %cst_35 : f32 to vector<8x16xf32>
    %38 = arith.cmpf ogt, %36, %37 : vector<8x16xf32>
    %cst_36 = arith.constant 2.000000e-01 : f32
    %39 = vector.broadcast %cst_36 : f32 to vector<8x16xf32>
    %40 = arith.mulf %39, %36 : vector<8x16xf32>
    %41 = arith.select %38, %36, %40 : vector<8x16xi1>, vector<8x16xf32>
    %c0_37 = arith.constant 0 : index
    %c0_38 = arith.constant 0 : index
    %c0_39 = arith.constant 0 : index
    %42 = vector.load %arg9[%c0_37, %c0_38, %c0_39] : memref<3x4x8xf32, #tpu.memory_space<vmem>>, vector<1x4x8xf32>
    %43 = vector.shape_cast %42 : vector<1x4x8xf32> to vector<4x8xf32>
    %cst_40 = arith.constant dense<0.000000e+00> : vector<4x16xf32>
    %44 = tpu.matmul %43, %41, %cst_40 {dimension_numbers = #tpu.dot_dimension_numbers<[1], [0], [0], [1], [0, 0, 1, 1], [], []>} : vector<4x8xf32>, vector<8x16xf32>, vector<4x16xf32> -> vector<4x16xf32>
    %c1_41 = arith.constant 1 : index
    %c0_42 = arith.constant 0 : index
    %c0_43 = arith.constant 0 : index
    %45 = vector.load %arg9[%c1_41, %c0_42, %c0_43] : memref<3x4x8xf32, #tpu.memory_space<vmem>>, vector<1x4x8xf32>
    %46 = vector.shape_cast %45 : vector<1x4x8xf32> to vector<4x8xf32>
    %cst_44 = arith.constant dense<0.000000e+00> : vector<4x16xf32>
    %47 = tpu.matmul %46, %41, %cst_44 {dimension_numbers = #tpu.dot_dimension_numbers<[1], [0], [0], [1], [0, 0, 1, 1], [], []>} : vector<4x8xf32>, vector<8x16xf32>, vector<4x16xf32> -> vector<4x16xf32>
    %c2_45 = arith.constant 2 : index
    %c0_46 = arith.constant 0 : index
    %c0_47 = arith.constant 0 : index
    %48 = vector.load %arg9[%c2_45, %c0_46, %c0_47] : memref<3x4x8xf32, #tpu.memory_space<vmem>>, vector<1x4x8xf32>
    %49 = vector.shape_cast %48 : vector<1x4x8xf32> to vector<4x8xf32>
    %cst_48 = arith.constant dense<0.000000e+00> : vector<4x16xf32>
    %50 = tpu.matmul %49, %41, %cst_48 {dimension_numbers = #tpu.dot_dimension_numbers<[1], [0], [0], [1], [0, 0, 1, 1], [], []>} : vector<4x8xf32>, vector<8x16xf32>, vector<4x16xf32> -> vector<4x16xf32>
    %51 = tpu.concatenate %44, %47, %50 in 1 : vector<4x16xf32>, vector<4x16xf32>, vector<4x16xf32> -> vector<4x48xf32>
    %c0_49 = arith.constant 0 : index
    %c0_50 = arith.constant 0 : index
    %52 = vector.load %arg8[%c0_49, %c0_50] : memref<48x8xf32, #tpu.memory_space<vmem>>, vector<48x8xf32>
    %cst_51 = arith.constant dense<0.000000e+00> : vector<4x8xf32>
    %53 = tpu.matmul %51, %52, %cst_51 {dimension_numbers = #tpu.dot_dimension_numbers<[1], [0], [0], [1], [0, 0, 1, 1], [], []>} : vector<4x48xf32>, vector<48x8xf32>, vector<4x8xf32> -> vector<4x8xf32>
    %c0_52 = arith.constant 0 : index
    %c0_53 = arith.constant 0 : index
    %54 = vector.load %arg10[%c0_52, %c0_53] : memref<1x8xf32, #tpu.memory_space<vmem>>, vector<1x8xf32>
    %55 = vector.broadcast %54 : vector<1x8xf32> to vector<4x8xf32>
    %56 = arith.addf %53, %55 : vector<4x8xf32>
    %cst_54 = arith.constant 0.000000e+00 : f32
    %57 = vector.broadcast %cst_54 : f32 to vector<4x8xf32>
    %58 = arith.cmpf ogt, %56, %57 : vector<4x8xf32>
    %cst_55 = arith.constant 2.000000e-01 : f32
    %59 = vector.broadcast %cst_55 : f32 to vector<4x8xf32>
    %60 = arith.mulf %59, %56 : vector<4x8xf32>
    %61 = arith.select %58, %56, %60 : vector<4x8xi1>, vector<4x8xf32>
    %c0_56 = arith.constant 0 : index
    %c0_57 = arith.constant 0 : index
    %62 = vector.load %arg11[%c0_56, %c0_57] : memref<2x4xf32, #tpu.memory_space<vmem>>, vector<2x4xf32>
    %cst_58 = arith.constant dense<0.000000e+00> : vector<2x8xf32>
    %63 = tpu.matmul %62, %61, %cst_58 {dimension_numbers = #tpu.dot_dimension_numbers<[1], [0], [0], [1], [0, 0, 1, 1], [], []>} : vector<2x4xf32>, vector<4x8xf32>, vector<2x8xf32> -> vector<2x8xf32>
    %c0_59 = arith.constant 0 : index
    %c0_60 = arith.constant 0 : index
    %64 = vector.load %arg12[%c0_59, %c0_60] : memref<8x128xf32, #tpu.memory_space<vmem>>, vector<8x128xf32>
    %cst_61 = arith.constant dense<0.000000e+00> : vector<2x128xf32>
    %65 = tpu.matmul %63, %64, %cst_61 {dimension_numbers = #tpu.dot_dimension_numbers<[1], [0], [0], [1], [0, 0, 1, 1], [], []>} : vector<2x8xf32>, vector<8x128xf32>, vector<2x128xf32> -> vector<2x128xf32>
    %c0_62 = arith.constant 0 : index
    %c0_63 = arith.constant 0 : index
    %66 = vector.load %arg13[%c0_62, %c0_63] : memref<1x128xf32, #tpu.memory_space<vmem>>, vector<1x128xf32>
    %67 = vector.broadcast %66 : vector<1x128xf32> to vector<2x128xf32>
    %68 = arith.addf %65, %67 : vector<2x128xf32>
    %cst_64 = arith.constant 0.000000e+00 : f32
    %69 = vector.broadcast %cst_64 : f32 to vector<2x128xf32>
    %70 = arith.cmpf ogt, %68, %69 : vector<2x128xf32>
    %cst_65 = arith.constant 2.000000e-01 : f32
    %71 = vector.broadcast %cst_65 : f32 to vector<2x128xf32>
    %72 = arith.mulf %71, %68 : vector<2x128xf32>
    %73 = arith.select %70, %68, %72 : vector<2x128xi1>, vector<2x128xf32>
    %c0_66 = arith.constant 0 : index
    %c0_67 = arith.constant 0 : index
    %c0_68 = arith.constant 0 : index
    %74 = vector.load %arg14[%c0_66, %c0_67, %c0_68] : memref<1x2x128xf32, #tpu.memory_space<vmem>>, vector<1x2x128xf32>
    %75 = vector.shape_cast %74 : vector<1x2x128xf32> to vector<2x128xf32>
    %76 = vector.shape_cast %73 : vector<2x128xf32> to vector<1x2x128xf32>
    tpu.vector_store %arg14[%c0_66, %c0_67, %c0_68], %76 {strides = array<i32>} : memref<1x2x128xf32, #tpu.memory_space<vmem>>, vector<1x2x128xf32>,
    return
  }
  func.func @transform_0(%arg0: i32) -> (i32, i32, i32) {
    %c0_i32 = arith.constant 0 : i32
    %c0_i32_0 = arith.constant 0 : i32
    %c0_i32_1 = arith.constant 0 : i32
    return %arg0, %c0_i32, %c0_i32_0 : i32, i32, i32
  }
  func.func @transform_1(%arg0: i32) -> (i32, i32) {
    %c0_i32 = arith.constant 0 : i32
    %c0_i32_0 = arith.constant 0 : i32
    %c0_i32_1 = arith.constant 0 : i32
    return %c0_i32, %c0_i32_0 : i32, i32
  }
  func.func @transform_2(%arg0: i32) -> (i32, i32, i32) {
    %c0_i32 = arith.constant 0 : i32
    %c0_i32_0 = arith.constant 0 : i32
    %c0_i32_1 = arith.constant 0 : i32
    %c0_i32_2 = arith.constant 0 : i32
    return %c0_i32, %c0_i32_0, %c0_i32_1 : i32, i32, i32
  }
  func.func @transform_3(%arg0: i32) -> (i32, i32) {
    %c0_i32 = arith.constant 0 : i32
    %c0_i32_0 = arith.constant 0 : i32
    %c0_i32_1 = arith.constant 0 : i32
    return %c0_i32, %c0_i32_0 : i32, i32
  }
  func.func @transform_4(%arg0: i32) -> (i32, i32) {
    %c0_i32 = arith.constant 0 : i32
    %c0_i32_0 = arith.constant 0 : i32
    %c0_i32_1 = arith.constant 0 : i32
    return %c0_i32, %c0_i32_0 : i32, i32
  }
  func.func @transform_5(%arg0: i32) -> (i32, i32, i32) {
    %c0_i32 = arith.constant 0 : i32
    %c0_i32_0 = arith.constant 0 : i32
    %c0_i32_1 = arith.constant 0 : i32
    %c0_i32_2 = arith.constant 0 : i32
    return %c0_i32, %c0_i32_0, %c0_i32_1 : i32, i32, i32
  }
  func.func @transform_6(%arg0: i32) -> (i32, i32) {
    %c0_i32 = arith.constant 0 : i32
    %c0_i32_0 = arith.constant 0 : i32
    %c0_i32_1 = arith.constant 0 : i32
    return %c0_i32, %c0_i32_0 : i32, i32
  }
  func.func @transform_7(%arg0: i32) -> (i32, i32) {
    %c0_i32 = arith.constant 0 : i32
    %c0_i32_0 = arith.constant 0 : i32
    %c0_i32_1 = arith.constant 0 : i32
    return %c0_i32, %c0_i32_0 : i32, i32
  }
  func.func @transform_8(%arg0: i32) -> (i32, i32, i32) {
    %c0_i32 = arith.constant 0 : i32
    %c0_i32_0 = arith.constant 0 : i32
    %c0_i32_1 = arith.constant 0 : i32
    %c0_i32_2 = arith.constant 0 : i32
    return %c0_i32, %c0_i32_0, %c0_i32_1 : i32, i32, i32
  }
  func.func @transform_9(%arg0: i32) -> (i32, i32) {
    %c0_i32 = arith.constant 0 : i32
    %c0_i32_0 = arith.constant 0 : i32
    %c0_i32_1 = arith.constant 0 : i32
    return %c0_i32, %c0_i32_0 : i32, i32
  }
  func.func @transform_10(%arg0: i32) -> (i32, i32) {
    %c0_i32 = arith.constant 0 : i32
    %c0_i32_0 = arith.constant 0 : i32
    %c0_i32_1 = arith.constant 0 : i32
    return %c0_i32, %c0_i32_0 : i32, i32
  }
  func.func @transform_11(%arg0: i32) -> (i32, i32) {
    %c0_i32 = arith.constant 0 : i32
    %c0_i32_0 = arith.constant 0 : i32
    %c0_i32_1 = arith.constant 0 : i32
    return %c0_i32, %c0_i32_0 : i32, i32
  }
  func.func @transform_12(%arg0: i32) -> (i32, i32) {
    %c0_i32 = arith.constant 0 : i32
    %c0_i32_0 = arith.constant 0 : i32
    %c0_i32_1 = arith.constant 0 : i32
    return %c0_i32, %c0_i32_0 : i32, i32
  }
  func.func @transform_13(%arg0: i32) -> (i32, i32, i32) {
    %c0_i32 = arith.constant 0 : i32
    %c0_i32_0 = arith.constant 0 : i32
    %c0_i32_1 = arith.constant 0 : i32
    return %arg0, %c0_i32, %c0_i32_0 : i32, i32, i32
  }
}

</mosaic_0001>

<bundles_post_ra>
// kernel: tpu_custom_call.1
= control target key start
LH: loop header
LB: loop body
LE: loop exit
PB: predicated region body
PF: predicated region fallthrough
CT: control target
= control target key end

     0   :  { %s2497_s0 = inlined_call_operand.vmem [shape: f32[4,16,64], index: 0, kind: input, shape index: {}]   ;;  %s2498_s1 = inlined_call_operand.vmem [shape: f32[192,32], index: 1, kind: input, shape index: {}]   ;;  %s2499_s2 = inlined_call_operand.vmem [shape: f32[3,16,32], index: 2, kind: input, shape index: {}]   ;;  %s2500_s3 = inlined_call_operand.vmem [shape: f32[1,32], index: 3, kind: input, shape index: {}]   ;;  %s2501_s4 = inlined_call_operand.vmem [shape: f32[96,16], index: 4, kind: input, shape index: {}]   ;;  %s2502_s5 = inlined_call_operand.vmem [shape: f32[3,8,16], index: 5, kind: input, shape index: {}]   ;;  %s2503_s6 = inlined_call_operand.vmem [shape: f32[1,16], index: 6, kind: input, shape index: {}]   ;;  %s2504_s7 = inlined_call_operand.vmem [shape: f32[48,8], index: 7, kind: input, shape index: {}]   ;;  %s2505_s8 = inlined_call_operand.vmem [shape: f32[3,4,8], index: 8, kind: input, shape index: {}]   ;;  %s2506_s9 = inlined_call_operand.vmem [shape: f32[1,8], index: 9, kind: input, shape index: {}]   ;;  %s2507_s10 = inlined_call_operand.vmem [shape: f32[2,4], index: 10, kind: input, shape index: {}]   ;;  %s2508_s11 = inlined_call_operand.vmem [shape: f32[8,128], index: 11, kind: input, shape index: {}]   ;;  %s2509_s12 = inlined_call_operand.vmem [shape: f32[1,128], index: 12, kind: input, shape index: {}]   ;;  %s2510_s13 = inlined_call_operand.hbm [shape: f32[2,2,128], index: 13, kind: output, shape index: {}]  }
   0x1   :  { %2511 = sst [smem:[#allocation6_spill]] %s2497_s0 }
   0x2   :  { %2512 = sst [smem:[#allocation7_spill]] %s2498_s1 }
   0x3   :  { %18 = vsyncpa [#allocation3], 0 }
   0x4   :  { %20 = vsyncpa [#allocation3 + $0x1], 0  ;;  %s2126_s25 = smov 0   ;;  %s2128_s26 = smov 0  }
   0x5   :  { %s2130_s27 = smov 0   ;;  %s2132_s28 = smov 0  }
   0x6 LB: > { %s2147_s29 = sadd.s32 4294967295, %s2048_s28   ;;  %s1722_s30 = sadd.s32 4294967294, %s2048_s28   ;;  %s2048_s28 = sphi %s2132_s28, %s2522_s28   ;;  %s2044_s27 = sphi %s2130_s27, %s2521_s27   ;;  %s2040_s26 = sphi %s2128_s26, %s2520_s26   ;;  %s2036_s25 = sphi %s2126_s25, %s2519_s25  }
   0x7   : > { %s2151_s14 = sadd.s32 1, %s2048_s28   ;;  %s311_s15 = sadd.s32 1, %s2044_s27 }
   0x8   : > { %s308_s16 = ssub.s32 %s2048_s28, %s2151_s14  ;;  %p321_p0 = scmp.ne.s32.totalorder %s2044_s27, %s2040_s26 }
   0x9   : > { %p309_p1 = scmp.eq.s32.totalorder %s308_s16, 0  ;;  %p322_p2 = scmp.eq.s32.totalorder %s2147_s29, 1 }
   0xa   : > { %p327_p3 = scmp.ne.s32.totalorder %s2040_s26, %s2036_s25  ;;  %p328_p4 = scmp.eq.s32.totalorder %s1722_s30, 1 }
   0xb   : > { %s2162_s17 = scalar_select %p309_p1, %s2044_s27, %s311_s15  }
   0xc   : > { %p2164_p5 = por %p322_p2, %p321_p0  ;;  %p2168_p6 = por %p328_p4, %p327_p3 }
   0xd   : > { %2513 = sst [smem:[#allocation5_spill]] %s2162_s17  ;;  %p1725_p7 = scmp.ge.s32.totalorder %s2048_s28, 1 }
   0xe   : > { %p392_p8 = scmp.lt.s32.totalorder %s2048_s28, 3 }
  0x10   : > { %p393_p9 = pnand %p1725_p7, %p392_p8 }
  0x11   : > { %s1727_s20 = sshll.u32 (!%p393_p9), %s2147_s29, 1  ;;  %s2516_s0 = sld [smem:[#allocation6_spill]] (!%p393_p9) }
  0x12   : > { %396 = sbr.rel (%p393_p9) target bundleno = 1987 (0x7c3), region = 72  ;;  %p438_p10 = scmp.lt.s32.totalorder (!%p393_p9), %s1727_s20, 3 }
  0x13   : > { %s2517_s1 = sld [smem:[#allocation7_spill]] (!%p393_p9)  ;;  %s2051_s22 = smov (!%p393_p9), 64  }
  0x14   : > { %s2053_s23 = smov (!%p393_p9), 32   ;;  %s2054_s15 = smov (!%p393_p9), 16  }
  0x17   : > { %vm450_vm0 = vcmask 261120   ;;  %v1732_v0 = vld [vmem:[%s2499_s2 + $0x10] sm:$0xff]  ;;  %v448_v1 = vld [vmem:[%s2499_s2] sm:$0xff]  ;;  %s2524_s20 = smov (!%p438_p10, %s1727_s20), 3  ;;  %v1733_v6 = vld [vmem:[%s2499_s2 + $0x18] sm:$0xff]  ;;  %v2050_v11 = vmov 0.0  }
  0x18   : > { %1842 = vmatprep.mubr.msk.f32.mxu1 %vm450_vm0, %v1732_v0  ;;  %1831 = vmatprep.mubr.msk.f32.mxu0 %vm450_vm0, %v448_v1  ;;  %s1765_s30 = sshll.u32 %s2524_s20, 4  ;;  %v449_v7 = vld [vmem:[%s2499_s2 + $0x8] sm:$0xff]  ;;  %v1736_v8 = vld [vmem:[%s2499_s2 + $0x20] sm:$0xff]  ;;  %vm708_vm1 = vcmask 523264   ;;  %vm2052_vm2 = vmmov 0   ;;  %vm830_vm5 = vcmask 130048  }
  0x19   : > { %s442_s17 = scalar_lea.vmem %s2516_s0, %s1765_s30  ;;  %v1737_v9 = vld [vmem:[%s2499_s2 + $0x28] sm:$0xff]  ;;  %v726_v10 = vld [vmem:[%s2517_s1 + $0x78] sm:$0xff]  ;;  %v725_v12 = vld [vmem:[%s2517_s1 + $0x70] sm:$0xff]  ;;  %vm1083_vm6 = vcmask 785408   ;;  %vm1161_vm8 = vcmask 64512   ;;  %vm1408_vm9 = vcmask 392192  }
  0x1a   : > { %v447_v2 = vld [vmem:[%s442_s17 + $0x18] sm:$0xff]  ;;  %v446_v3 = vld [vmem:[%s442_s17 + $0x10] sm:$0xff]  ;;  %v445_v4 = vld [vmem:[%s442_s17 + $0x8] sm:$0xff]  ;;  %vm1490_vm11 = vcmask 1043456   ;;  %vm1486_vm12 = vcmask 31744   ;;  %s1762_s20 = sshll.u32 %s2147_s29, 5 }
  0x1b   : > { %1834 = vmatprep.subr.mxu1 %v447_v2  ;;  %1823 = vmatprep.subr.mxu0 %v447_v2  ;;  %v444_v5 = vld [vmem:[%s442_s17] sm:$0xff]  ;;  %v724_v13 = vld [vmem:[%s2517_s1 + $0x68] sm:$0xff]  ;;  %v722_v15 = vld [vmem:[%s2517_s1 + $0x58] sm:$0xff]  ;;  %s2462_s0 = scalar_lea.hbm %s2510_s13, %s1762_s20  ;;  %s2055_s29 = smov [#allocation2]  }
  0x1c   : > { %1835 = vmatpush3.msra.mxu1 %v447_v2  ;;  %1824 = vmatpush3.msra.mxu0 %v447_v2  ;;  %v723_v14 = vld [vmem:[%s2517_s1 + $0x60] sm:$0xff]  ;;  %v721_v16 = vld [vmem:[%s2517_s1 + $0x50] sm:$0xff]  ;;  %v720_v17 = vld [vmem:[%s2517_s1 + $0x48] sm:$0xff] }
  0x1d   : > { %1836 = vmatprep.subr.mxu1 %v446_v3  ;;  %1825 = vmatprep.subr.mxu0 %v446_v3  ;;  %v719_v18 = vld [vmem:[%s2517_s1 + $0x40] sm:$0xff]  ;;  %v718_v19 = vld [vmem:[%s2517_s1 + $0x38] sm:$0xff]  ;;  %v717_v20 = vld [vmem:[%s2517_s1 + $0x30] sm:$0xff] }
  0x1e   : > { %1837 = vmatpush3.msra.mxu1 %v446_v3  ;;  %1826 = vmatpush3.msra.mxu0 %v446_v3  ;;  %v716_v21 = vld [vmem:[%s2517_s1 + $0x28] sm:$0xff]  ;;  %v715_v22 = vld [vmem:[%s2517_s1 + $0x20] sm:$0xff]  ;;  %v714_v23 = vld [vmem:[%s2517_s1 + $0x18] sm:$0xff] }
  0x1f   : > { %1838 = vmatprep.subr.mxu1 %v445_v4  ;;  %1827 = vmatprep.subr.mxu0 %v445_v4  ;;  %v713_v24 = vld [vmem:[%s2517_s1 + $0x10] sm:$0xff]  ;;  %v712_v25 = vld [vmem:[%s2517_s1 + $0x8] sm:$0xff]  ;;  %v711_v26 = vld [vmem:[%s2517_s1] sm:$0xff] }
  0x20   : > { %1839 = vmatpush3.msra.mxu1 %v445_v4  ;;  %1828 = vmatpush3.msra.mxu0 %v445_v4  ;;  %v734_v27 = vld [vmem:[%s2517_s1 + $0xb8] sm:$0xff]  ;;  %v733_v28 = vld [vmem:[%s2517_s1 + $0xb0] sm:$0xff]  ;;  %v732_v29 = vld [vmem:[%s2517_s1 + $0xa8] sm:$0xff] }
  0x21   : > { %1840 = vmatprep.subr.mxu1 %v444_v5  ;;  %1829 = vmatprep.subr.mxu0 %v444_v5  ;;  %v731_v30 = vld [vmem:[%s2517_s1 + $0xa0] sm:$0xff]  ;;  %v730_v31 = vld [vmem:[%s2517_s1 + $0x98] sm:$0xff]  ;;  %v729_v32 = vld [vmem:[%s2517_s1 + $0x90] sm:$0xff] }
  0x22   : > { %1841 = vmatpush3.msra.mxu1 %v444_v5  ;;  %1830 = vmatpush3.msra.mxu0 %v444_v5  ;;  %v728_v33 = vld [vmem:[%s2517_s1 + $0x88] sm:$0xff]  ;;  %v727_v34 = vld [vmem:[%s2517_s1 + $0x80] sm:$0xff]  ;;  %v1746_v58 = vld [vmem:[%s2502_s5 + $0x10] sm:$0xff] }
  0x23   : > { %1843 = vmatmul.mubr.msk.f32.vlgmr.msra.gmra.mxu1 %vm450_vm0, %v1733_v6  ;;  %1845 = vmatprep.subr.mxu0 %v447_v2  ;;  %v1740_v45 = vld [vmem:[%s2500_s3] ss:$0 sm:$0xff]  ;;  %v1744_v57 = vld [vmem:[%s2502_s5 + $0x8] sm:$0xff]  ;;  %v1075_v59 = vld [vmem:[%s2501_s4 + $0x58] sm:$0xff] }
  0x24   : > { %1832 = vmatmul.mubr.msk.f32.vlgmr.msra.gmra.mxu0 %vm450_vm0, %v449_v7  ;;  %748 = vmatprep.subr.mxu1 %v2050_v11  ;;  %v829_v55 = vld [vmem:[%s2502_s5] sm:$0xff]  ;;  %v1074_v60 = vld [vmem:[%s2501_s4 + $0x50] sm:$0xff]  ;;  %v1073_v61 = vld [vmem:[%s2501_s4 + $0x48] sm:$0xff] }
  0x25   : > { %1846 = vmatpush3.msra.mxu0 %v447_v2  ;;  %1853 = vmatprep.mubr.msk.f32.mxu0 %vm450_vm0, %v1736_v8  ;;  %v1072_v62 = vld [vmem:[%s2501_s4 + $0x40] sm:$0xff]  ;;  %v1071_v63 = vld [vmem:[%s2501_s4 + $0x38] sm:$0xff]  ;;  %v1070_v0 = vld [vmem:[%s2501_s4 + $0x30] sm:$0xff] }
  0x26   : > { %1847 = vmatprep.subr.mxu0 %v446_v3  ;;  %749 = vmatpush1.msra.mxu1 %v726_v10  ;;  %v1069_v1 = vld [vmem:[%s2501_s4 + $0x28] sm:$0xff]  ;;  %v1068_v2 = vld [vmem:[%s2501_s4 + $0x20] sm:$0xff] }
  0x27   : > { %1848 = vmatpush3.msra.mxu0 %v446_v3  ;;  %750 = vmatprep.subr.mxu1 %v2050_v11  ;;  %v1067_v3 = vld [vmem:[%s2501_s4 + $0x18] sm:$0xff]  ;;  %v1064_v6 = vld [vmem:[%s2501_s4] sm:$0xff] }
  0x28   : > { %1849 = vmatprep.subr.mxu0 %v445_v4  ;;  %751 = vmatpush1.msra.mxu1 %v725_v12 }
  0x29   : > { %1850 = vmatpush3.msra.mxu0 %v445_v4  ;;  %752 = vmatprep.subr.mxu1 %v2050_v11  ;;  %v1066_v4 = vld [vmem:[%s2501_s4 + $0x10] sm:$0xff] }
  0x2a   : > { %1851 = vmatprep.subr.mxu0 %v444_v5  ;;  %753 = vmatpush1.msra.mxu1 %v724_v13 }
  0x2b   : > { %1852 = vmatpush3.msra.mxu0 %v444_v5  ;;  %754 = vmatprep.subr.mxu1 %v2050_v11  ;;  %v1065_v5 = vld [vmem:[%s2501_s4 + $0x8] sm:$0xff] }
  0x2c   : > { %1854 = vmatmul.mubr.msk.f32.vlgmr.msra.gmra.mxu0 %vm450_vm0, %v1737_v9  ;;  %1856 = vmatprep.subr.mxu0 %v2050_v11 }
  0x2d   : > { %755 = vmatpush1.msra.mxu1 %v723_v14  ;;  %1860 = vmatprep.mubr.msk.f32.mxu0 %vm2052_vm2, %v2050_v11 }
  0x2e   : > { %756 = vmatprep.subr.mxu1 %v2050_v11 }
  0x2f   : > { %757 = vmatpush1.msra.mxu1 %v722_v15 }
  0x30   : > { %758 = vmatprep.subr.mxu1 %v2050_v11 }
  0x31   : > { %759 = vmatpush1.msra.mxu1 %v721_v16 }
  0x32   : > { %760 = vmatprep.subr.mxu1 %v2050_v11 }
  0x33   : > { %761 = vmatpush1.msra.mxu1 %v720_v17 }
  0x34   : > { %762 = vmatprep.subr.mxu1 %v2050_v11 }
  0x35   : > { %763 = vmatpush1.msra.mxu1 %v719_v18  ;;  %v1748_v18 = vld [vmem:[%s2503_s6] ss:$0 sm:$0xff] }
  0x36   : > { %764 = vmatprep.subr.mxu1 %v2050_v11 }
  0x37   : > { %765 = vmatpush1.msra.mxu1 %v718_v19 }
  0x38   : > { %766 = vmatprep.subr.mxu1 %v2050_v11 }
  0x39   : > { %767 = vmatpush1.msra.mxu1 %v717_v20 }
  0x3a   : > { %768 = vmatprep.subr.mxu1 %v2050_v11 }
  0x3b   : > { %769 = vmatpush1.msra.mxu1 %v716_v21 }
  0x3c   : > { %770 = vmatprep.subr.mxu1 %v2050_v11 }
  0x3d   : > { %771 = vmatpush1.msra.mxu1 %v715_v22 }
  0x3e   : > { %772 = vmatprep.subr.mxu1 %v2050_v11 }
  0x3f   : > { %773 = vmatpush1.msra.mxu1 %v714_v23  ;;  %v1160_v23 = vld [vmem:[%s2505_s8] sm:$0xf] }
  0x40   : > { %774 = vmatprep.subr.mxu1 %v2050_v11 }
  0x41   : > { %775 = vmatpush1.msra.mxu1 %v713_v24 }
  0x42   : > { %776 = vmatprep.subr.mxu1 %v2050_v11 }
  0x43   : > { %777 = vmatpush1.msra.mxu1 %v712_v25  ;;  %v1751_v25 = vld [vmem:[%s2505_s8 + $0x4] sm:$0xf] }
  0x44   : > { %778 = vmatprep.subr.mxu1 %v2050_v11 }
  0x45   : > { %779 = vmatpush1.msra.mxu1 %v711_v26  ;;  %v1753_v26 = vld [vmem:[%s2505_s8 + $0x8] sm:$0xf] }
  0x46   : > { %796 = vmatprep.subr.mxu1 %v2050_v11 }
  0x47   : > { %797 = vmatpush2.msra.mxu1 %v734_v27  ;;  %v1400_v27 = vld [vmem:[%s2504_s7 + $0x28] sm:$0xff] }
  0x48   : > { %798 = vmatprep.subr.mxu1 %v2050_v11 }
  0x49   : > { %799 = vmatpush2.msra.mxu1 %v733_v28  ;;  %v1399_v28 = vld [vmem:[%s2504_s7 + $0x20] sm:$0xff] }
  0x4a   : > { %800 = vmatprep.subr.mxu1 %v2050_v11 }
  0x4b   : > { %801 = vmatpush2.msra.mxu1 %v732_v29  ;;  %v1398_v29 = vld [vmem:[%s2504_s7 + $0x18] sm:$0xff] }
  0x4c   : > { %802 = vmatprep.subr.mxu1 %v2050_v11 }
  0x4d   : > { %803 = vmatpush2.msra.mxu1 %v731_v30  ;;  %v1397_v30 = vld [vmem:[%s2504_s7 + $0x10] sm:$0xff] }
  0x4e   : > { %804 = vmatprep.subr.mxu1 %v2050_v11 }
  0x4f   : > { %805 = vmatpush2.msra.mxu1 %v730_v31  ;;  %v1396_v31 = vld [vmem:[%s2504_s7 + $0x8] sm:$0xff] }
  0x50   : > { %806 = vmatprep.subr.mxu1 %v2050_v11 }
  0x51   : > { %807 = vmatpush2.msra.mxu1 %v729_v32  ;;  %v1395_v32 = vld [vmem:[%s2504_s7] sm:$0xff] }
  0x52   : > { %808 = vmatprep.subr.mxu1 %v2050_v11 }
  0x53   : > { %809 = vmatpush2.msra.mxu1 %v728_v33 }
  0x54   : > { %810 = vmatprep.subr.mxu1 %v2050_v11 }
  0x55   : > { %811 = vmatpush2.msra.mxu1 %v727_v34 }
  0x56   : > { %1919 = vmatprep.subr.mxu1 %v2050_v11 }
  0xe3   : > { %v1844_v35 = vpop.f32.mrf.mxu1 }
  0xe4   : > { %v1833_v37 = vpop.f32.mrf.mxu0 }
  0xe5   : > { %v607_v36 = vpop.f32.mrf.mxu1 }
  0xe6   : > { %702 = vrot.lane.b32.xlu0 %v607_v36, %s2051_s22  ;;  %v523_v38 = vpop.f32.mrf.mxu0 }
  0xea   : > { %704 = vrot.lane.b32.xlu0 %v1844_v35, %s2051_s22 }
  0xec   : > { %v1855_v39 = vpop.f32.mrf.mxu0 }
  0xee   : > { %v691_v40 = vpop.f32.mrf.mxu0 }
  0xef   : > { %1741 = vmatprep.mubr.msk.f32.mxu1 %vm708_vm1, %v691_v40 }
 0x158   : > { %v703_v41 = vpop.permute.xlu0 %702 }
 0x159   : > { %v709_v42 = vsel %vm708_vm1, %v523_v38, %v703_v41 }
 0x15a   : > { %813 = vmatmul.mubr.f32.vlgmr.msra.gmra.mxu1 %v709_v42 }
 0x15b   : > { %1742 = vmatprep.mubr.msk.f32.mxu1 %vm708_vm1, %v1855_v39  ;;  %1920 = vmatpush3.msra.mxu1 %v1400_v27 }
 0x15c   : > { %v705_v43 = vpop.permute.xlu0 %704  ;;  %1921 = vmatprep.subr.mxu1 %v2050_v11 }
 0x15d   : > { %v710_v44 = vsel %vm708_vm1, %v1833_v37, %v705_v43  ;;  %1922 = vmatpush3.msra.mxu1 %v1399_v28  ;;  %v1755_v43 = vld [vmem:[%s2506_s9] ss:$0 sm:$0xff] }
 0x15e   : > { %818 = vmatmul.mubr.f32.gmra.mxu1 %v710_v44  ;;  %1923 = vmatprep.subr.mxu1 %v2050_v11 }
 0x15f   : > { %1931 = vmatprep.mubr.msk.f32.mxu1 %vm2052_vm2, %v2050_v11  ;;  %1924 = vmatpush3.msra.mxu1 %v1398_v29 }
 0x160   : > { %1925 = vmatprep.subr.mxu1 %v2050_v11 }
 0x161   : > { %1926 = vmatpush3.msra.mxu1 %v1397_v30 }
 0x162   : > { %1927 = vmatprep.subr.mxu1 %v2050_v11 }
 0x163   : > { %1928 = vmatpush3.msra.mxu1 %v1396_v31 }
 0x164   : > { %1929 = vmatprep.subr.mxu1 %v2050_v11 }
 0x165   : > { %1930 = vmatpush3.msra.mxu1 %v1395_v32 }
 0x21a   : > { %v814_v46 = vpop.f32.mrf.mxu1 }
 0x21b   : > { %v815_v48 = vadd.f32 %v1740_v45, %v814_v46 }
 0x21c   : > { %v816_v47 = vpop.f32.mrf.mxu1 }
 0x21d   : > { %v825_v52 = vmul.f32 0.2, %v815_v48  ;;  %vm823_vm4 = vcmp.gt.f32.partialorder %v815_v48, 0.0 }
 0x21e   : > { %v819_v49 = vpop.f32.mrf.mxu1 }
 0x21f   : > { %v820_v50 = vadd.f32 %v1740_v45, %v819_v49  ;;  %v827_v56 = vsel %vm823_vm4, %v815_v48, %v825_v52  ;;  %v1485_v48 = vld [vmem:[%s2507_s10] sm:$0x3] }
 0x220   : > { %v821_v51 = vpop.f32.mrf.mxu1 }
 0x221   : > { %vm824_vm3 = vcmp.gt.f32.partialorder %v820_v50, 0.0  ;;  %v826_v53 = vmul.f32 0.2, %v820_v50 }
 0x223   : > { %v828_v54 = vsel %vm824_vm3, %v820_v50, %v826_v53  ;;  %v1564_v50 = vld [vmem:[%s2508_s11] sm:$0xff] }
 0x224   : > { %1857 = vmatpush3.msra.mxu0 %v828_v54  ;;  %v1759_v53 = vld [vmem:[%s2509_s12] ss:$0 sm:$0xff] }
 0x225   : > { %1858 = vmatprep.subr.mxu0 %v2050_v11 }
 0x226   : > { %1859 = vmatpush3.msra.mxu0 %v827_v56 }
 0x227   : > { %1861 = vmatmul.mubr.msk.f32.vlgmr.msra.gmra.mxu0 %vm830_vm5, %v829_v55  ;;  %1863 = vmatprep.subr.mxu0 %v2050_v11 }
 0x228   : > { %1864 = vmatpush3.msra.mxu0 %v828_v54  ;;  %1867 = vmatprep.mubr.msk.f32.mxu0 %vm2052_vm2, %v2050_v11 }
 0x229   : > { %1865 = vmatprep.subr.mxu0 %v2050_v11 }
 0x22a   : > { %1866 = vmatpush3.msra.mxu0 %v827_v56 }
 0x22b   : > { %1868 = vmatmul.mubr.msk.f32.vlgmr.msra.gmra.mxu0 %vm830_vm5, %v1744_v57  ;;  %1870 = vmatprep.subr.mxu0 %v2050_v11 }
 0x22c   : > { %1871 = vmatpush3.msra.mxu0 %v828_v54  ;;  %1874 = vmatprep.mubr.msk.f32.mxu0 %vm2052_vm2, %v2050_v11 }
 0x22d   : > { %1872 = vmatprep.subr.mxu0 %v2050_v11 }
 0x22e   : > { %1873 = vmatpush3.msra.mxu0 %v827_v56 }
 0x22f   : > { %1875 = vmatmul.mubr.msk.f32.vlgmr.msra.gmra.mxu0 %vm830_vm5, %v1746_v58  ;;  %1877 = vmatprep.subr.mxu0 %v2050_v11 }
 0x230   : > { %1901 = vmatprep.mubr.msk.f32.mxu0 %vm2052_vm2, %v2050_v11  ;;  %1878 = vmatpush3.msra.mxu0 %v1075_v59 }
 0x231   : > { %1879 = vmatprep.subr.mxu0 %v2050_v11 }
 0x232   : > { %1880 = vmatpush3.msra.mxu0 %v1074_v60 }
 0x233   : > { %1881 = vmatprep.subr.mxu0 %v2050_v11 }
 0x234   : > { %1882 = vmatpush3.msra.mxu0 %v1073_v61 }
 0x235   : > { %1883 = vmatprep.subr.mxu0 %v2050_v11 }
 0x236   : > { %1884 = vmatpush3.msra.mxu0 %v1072_v62 }
 0x237   : > { %1885 = vmatprep.subr.mxu0 %v2050_v11 }
 0x238   : > { %1886 = vmatpush3.msra.mxu0 %v1071_v63 }
 0x239   : > { %1887 = vmatprep.subr.mxu0 %v2050_v11 }
 0x23a   : > { %1888 = vmatpush3.msra.mxu0 %v1070_v0 }
 0x23b   : > { %1889 = vmatprep.subr.mxu0 %v2050_v11 }
 0x23c   : > { %1890 = vmatpush3.msra.mxu0 %v1069_v1 }
 0x23d   : > { %1891 = vmatprep.subr.mxu0 %v2050_v11 }
 0x23e   : > { %1892 = vmatpush3.msra.mxu0 %v1068_v2 }
 0x23f   : > { %1893 = vmatprep.subr.mxu0 %v2050_v11 }
 0x240   : > { %1894 = vmatpush3.msra.mxu0 %v1067_v3 }
 0x241   : > { %1895 = vmatprep.subr.mxu0 %v2050_v11 }
 0x242   : > { %1896 = vmatpush3.msra.mxu0 %v1066_v4 }
 0x243   : > { %1897 = vmatprep.subr.mxu0 %v2050_v11 }
 0x244   : > { %1898 = vmatpush3.msra.mxu0 %v1065_v5 }
 0x245   : > { %1899 = vmatprep.subr.mxu0 %v2050_v11 }
 0x246   : > { %1900 = vmatpush3.msra.mxu0 %v1064_v6 }
 0x247   : > { %1904 = vmatprep.subr.mxu0 %v2050_v11 }
 0x2e7   : > { %v900_v7 = vpop.f32.mrf.mxu0 }
 0x2e9   : > { %v1862_v8 = vpop.f32.mrf.mxu0 }
 0x2eb   : > { %v975_v9 = vpop.f32.mrf.mxu0 }
 0x2ec   : > { %1055 = vrot.lane.b32.xlu1 %v975_v9, %s2053_s23 }
 0x2ed   : > { %v1869_v10 = vpop.f32.mrf.mxu0 }
 0x2ef   : > { %v1050_v12 = vpop.f32.mrf.mxu0 }
 0x2f0   : > { %1059 = vrot.lane.b32.xlu1 %v1050_v12, %s2051_s22  ;;  %s434_s22 = sand.u32 1, %s2040_s26  }
 0x2f1   : > { %v1876_v13 = vpop.f32.mrf.mxu0  ;;  %s1726_s17 = sshll.u32 %s434_s22, 1  ;;  %s1650_s1 = scalar_lea.sflag [#allocation3], %s434_s22 }
 0x35e   : > { %v1056_v14 = vpop.permute.xlu1 %1055 }
 0x35f   : > { %v1062_v15 = vsel %vm450_vm0, %v900_v7, %v1056_v14 }
 0x362   : > { %v1060_v16 = vpop.permute.xlu1 %1059 }
 0x363   : > { %v1063_v17 = vsel %vm708_vm1, %v1062_v15, %v1060_v16 }
 0x364   : > { %1902 = vmatmul.mubr.msk.f32.vlgmr.msra.gmra.mxu0 %vm1083_vm6, %v1063_v17 }
 0x365   : > { %1906 = vmatprep.mubr.msk.f32.mxu0 %vm2052_vm2, %v2050_v11 }
 0x424   : > { %v1153_v19 = vpop.f32.mrf.mxu0 }
 0x425   : > { %v1154_v20 = vadd.f32 %v1748_v18, %v1153_v19 }
 0x426   : > { %v1903_v21 = vpop.f32.mrf.mxu0 }
 0x427   : > { %vm1157_vm7 = vcmp.gt.f32.partialorder %v1154_v20, 0.0  ;;  %v1158_v22 = vmul.f32 0.2, %v1154_v20 }
 0x429   : > { %v1159_v24 = vsel %vm1157_vm7, %v1154_v20, %v1158_v22 }
 0x42a   : > { %1905 = vmatpush3.msra.mxu0 %v1159_v24 }
 0x42b   : > { %1907 = vmatmul.mubr.msk.f32.vlgmr.msra.gmra.mxu0 %vm1161_vm8, %v1160_v23  ;;  %1909 = vmatprep.subr.mxu0 %v2050_v11 }
 0x42c   : > { %1910 = vmatpush3.msra.mxu0 %v1159_v24  ;;  %1911 = vmatprep.mubr.msk.f32.mxu0 %vm2052_vm2, %v2050_v11 }
 0x42d   : > { %1914 = vmatprep.subr.mxu0 %v2050_v11 }
 0x42f   : > { %1912 = vmatmul.mubr.msk.f32.vlgmr.msra.gmra.mxu0 %vm1161_vm8, %v1751_v25 }
 0x430   : > { %1915 = vmatpush3.msra.mxu0 %v1159_v24  ;;  %1916 = vmatprep.mubr.msk.f32.mxu0 %vm2052_vm2, %v2050_v11 }
 0x431   : > { %1934 = vmatprep.subr.mxu0 %v2050_v11 }
 0x433   : > { %1917 = vmatmul.mubr.msk.f32.vlgmr.msra.gmra.mxu0 %vm1161_vm8, %v1753_v26 }
 0x434   : > { %1936 = vmatprep.mubr.msk.f32.mxu0 %vm2052_vm2, %v2050_v11 }
 0x4eb   : > { %v1231_v33 = vpop.f32.mrf.mxu0 }
 0x4ed   : > { %v1908_v34 = vpop.f32.mrf.mxu0 }
 0x4ef   : > { %v1306_v35 = vpop.f32.mrf.mxu0 }
 0x4f0   : > { %1386 = vrot.lane.b32.xlu0 %v1306_v35, %s2054_s15 }
 0x4f1   : > { %v1913_v36 = vpop.f32.mrf.mxu0 }
 0x4f3   : > { %v1381_v37 = vpop.f32.mrf.mxu0 }
 0x4f4   : > { %1390 = vrot.lane.b32.xlu1 %v1381_v37, %s2053_s23  ;;  %s436_s23 = scalar_lea.vmem [#allocation2], %s1726_s17  ;;  %s1992_s17 = sshll.u32 %s2055_s29, 4  ;;  %s1993_s17 = int_to_ptr.vmem [resolvable:$false] %s1992_s17 }
 0x4f5   : > { %v1918_v38 = vpop.f32.mrf.mxu0  ;;  %s1663_s21 = sshll.u32 %s436_s23, 4  ;;  %s1994_s16 = scalar_lea.vmem %s1993_s17, 64  ;;  %s1664_s21 = int_to_ptr.vmem [resolvable:$true] %s1663_s21 }
 0x4f6   : > { %s1988_s15 = scalar_lea.vmem %s1664_s21, 32  ;;  %p1995_p0 = scmp.lt.s32.totalorder %s1664_s21, %s1993_s17 }
 0x4f7   : > { %p1989_p11 = scmp.ne.s32.totalorder %s1664_s21, %s1988_s15  ;;  %p1996_p1 = scmp.lt.s32.totalorder %s1994_s16, %s1988_s15 }
 0x4f9   : > { %p1990_p12 = pnand %p1989_p11, %p2164_p5  ;;  %p1997_p2 = por %p1996_p1, %p1995_p0 }
 0x4fb   : > { %p1991_p13 = pneg %p1990_p12 }
 0x4fd   : > { %p1998_p3 = pnand %p1997_p2, %p1991_p13 }
 0x562   : > { %v1387_v39 = vpop.permute.xlu0 %1386 }
 0x563   : > { %v1393_v40 = vsel %vm830_vm5, %v1231_v33, %v1387_v39 }
 0x566   : > { %v1391_v41 = vpop.permute.xlu1 %1390 }
 0x567   : > { %v1394_v42 = vsel %vm450_vm0, %v1393_v40, %v1391_v41 }
 0x568   : > { %1932 = vmatmul.mubr.msk.f32.vlgmr.msra.gmra.mxu1 %vm1408_vm9, %v1394_v42 }
 0x628   : > { %v1478_v44 = vpop.f32.mrf.mxu1 }
 0x629   : > { %v1479_v45 = vadd.f32 %v1755_v43, %v1478_v44 }
 0x62a   : > { %v1933_v46 = vpop.f32.mrf.mxu1 }
 0x62b   : > { %vm1482_vm10 = vcmp.gt.f32.partialorder %v1479_v45, 0.0  ;;  %v1483_v47 = vmul.f32 0.2, %v1479_v45 }
 0x62d   : > { %v1484_v49 = vsel %vm1482_vm10, %v1479_v45, %v1483_v47 }
 0x62e   : > { %1935 = vmatpush3.msk.msra.mxu0 %vm1490_vm11, %v1484_v49 }
 0x62f   : > { %1937 = vmatmul.mubr.msk.f32.vlgmr.msra.gmra.mxu0 %vm1486_vm12, %v1485_v48  ;;  %1939 = vmatprep.subr.mxu0 %v2050_v11 }
 0x630   : > { %1940 = vmatpush3.msra.mxu0 %v1564_v50  ;;  %1941 = vmatprep.mubr.msk.f32.mxu0 %vm2052_vm2, %v2050_v11 }
 0x6ef   : > { %v1560_v51 = vpop.f32.mrf.mxu0 }
 0x6f0   : > { %1942 = vmatmul.mubr.msk.f32.vlgmr.msra.gmra.mxu0 %vm1161_vm8, %v1560_v51 }
 0x6f1   : > { %v1938_v52 = vpop.f32.mrf.mxu0 }
 0x7b0   : > { %v1641_v54 = vpop.f32.mrf.mxu0 }
 0x7b1   : > { %v1642_v55 = vadd.f32 %v1759_v53, %v1641_v54 }
 0x7b2   : > { %v1943_v56 = vpop.f32.mrf.mxu0 }
 0x7b3   : > { %vm1645_vm13 = vcmp.gt.f32.partialorder %v1642_v55, 0.0  ;;  %v1646_v57 = vmul.f32 0.2, %v1642_v55 }
 0x7b5   : > { %v1647_v11 = vsel %vm1645_vm13, %v1642_v55, %v1646_v57 }
 0x7b6   : > { %1648 = vst [vmem:[%s436_s23] sm:$0x3] %v1647_v11 }
 0x7b7   : > { %2001 = shalt.err (!%p1998_p3)
}
 0x7b8   : > { %s2002_s20 = scalar_lea.hbm %s2462_s0, 32  ;;  %s2006_s24 = scalar_lea.hbm %s2510_s13, 64 }
 0x7b9   : > { %p2003_p4 = scmp.ne.s32.totalorder %s2462_s0, %s2002_s20  ;;  %p2007_p9 = scmp.lt.s32.totalorder %s2462_s0, %s2510_s13 }
 0x7ba   : > { %p2008_p10 = scmp.lt.s32.totalorder %s2006_s24, %s2002_s20 }
 0x7bb   : > { %p2004_p7 = pnand %p2003_p4, %p2164_p5 }
 0x7bc   : > { %p2009_p11 = por %p2008_p10, %p2007_p9 }
 0x7bd   : > { %p2005_p8 = pneg %p2004_p7 }
 0x7bf   : > { %p2010_p12 = pnand %p2009_p11, %p2005_p8 }
 0x7c1   : > { %2013 = shalt.err (!%p2010_p12)
}
 0x7c2   : > { %1944 = dma.vmem_to_hbm [thread:$0]  (%p2164_p5), %s1664_s21, 32, %s2462_s0, %s1650_s1  }
 0x7c3 PF: > { %p1950_p13 = scmp.ge.s32.totalorder %s2048_s28, 2  ;;  %s1675_s15 = sand.u32 1, %s2036_s25  }
 0x7c4   : > { %s1676_s17 = scalar_lea.sflag [#allocation3], %s1675_s15 }
 0x7c5   : > { %p1947_p0 = pnand %p1950_p13, %p2168_p6 }
 0x7c7   : > { %p1948_p1 = pneg %p1947_p0 }
 0x7c9   : > { %2031 = dma.done.wait (%p1948_p1), %s1676_s17, 32  }
 0x7ca   : > { %2033 = vsyncadd (%p1948_p1), %s1676_s17, 4294967264  ;;  %s2518_s16 = sld [smem:[#allocation5_spill]]  ;;  %p23_p2 = scmp.ge.s32.totalorder %s2151_s14, 4  }
 0x7cb   : > { %s2519_s25 = smov %s2040_s26  ;;  %s2520_s26 = smov %s2044_s27 }
 0x7cc   : > { %s2522_s28 = smov %s2151_s14  ;;  %25 = sbr.rel (!%p23_p2) target bundleno = 6 (0x6), region = 113 }
 0x7d0   : > { %s2521_s27 = smov %s2518_s16 }
 0x7d1   :  { %1681 = vsyncpa [#allocation3], 1 }
 0x7d2   :  { %1683 = vsyncpa [#allocation3 + $0x1], 1 }

// kernel: tpu_custom_call.1
= control target key start
LH: loop header
LB: loop body
LE: loop exit
PB: predicated region body
PF: predicated region fallthrough
CT: control target
= control target key end

     0   :  { %s2497_s0 = inlined_call_operand.vmem [shape: f32[4,16,64], index: 0, kind: input, shape index: {}]   ;;  %s2498_s1 = inlined_call_operand.vmem [shape: f32[192,32], index: 1, kind: input, shape index: {}]   ;;  %s2499_s2 = inlined_call_operand.vmem [shape: f32[3,16,32], index: 2, kind: input, shape index: {}]   ;;  %s2500_s3 = inlined_call_operand.vmem [shape: f32[1,32], index: 3, kind: input, shape index: {}]   ;;  %s2501_s4 = inlined_call_operand.vmem [shape: f32[96,16], index: 4, kind: input, shape index: {}]   ;;  %s2502_s5 = inlined_call_operand.vmem [shape: f32[3,8,16], index: 5, kind: input, shape index: {}]   ;;  %s2503_s6 = inlined_call_operand.vmem [shape: f32[1,16], index: 6, kind: input, shape index: {}]   ;;  %s2504_s7 = inlined_call_operand.vmem [shape: f32[48,8], index: 7, kind: input, shape index: {}]   ;;  %s2505_s8 = inlined_call_operand.vmem [shape: f32[3,4,8], index: 8, kind: input, shape index: {}]   ;;  %s2506_s9 = inlined_call_operand.vmem [shape: f32[1,8], index: 9, kind: input, shape index: {}]   ;;  %s2507_s10 = inlined_call_operand.vmem [shape: f32[2,4], index: 10, kind: input, shape index: {}]   ;;  %s2508_s11 = inlined_call_operand.vmem [shape: f32[8,128], index: 11, kind: input, shape index: {}]   ;;  %s2509_s12 = inlined_call_operand.vmem [shape: f32[1,128], index: 12, kind: input, shape index: {}]   ;;  %s2510_s13 = inlined_call_operand.hbm [shape: f32[2,2,128], index: 13, kind: output, shape index: {}]  }
   0x1   :  { %2511 = sst [smem:[#allocation6_spill]] %s2497_s0 }
   0x2   :  { %2512 = sst [smem:[#allocation7_spill]] %s2498_s1 }
   0x3   :  { %18 = vsyncpa [#allocation3], 0 }
   0x4   :  { %20 = vsyncpa [#allocation3 + $0x1], 0  ;;  %s2126_s25 = smov 0   ;;  %s2128_s26 = smov 0  }
   0x5   :  { %s2130_s27 = smov 0   ;;  %s2132_s28 = smov 0  }
   0x6 LB: > { %s2147_s29 = sadd.s32 4294967295, %s2048_s28   ;;  %s1722_s30 = sadd.s32 4294967294, %s2048_s28   ;;  %s2048_s28 = sphi %s2132_s28, %s2522_s28   ;;  %s2044_s27 = sphi %s2130_s27, %s2521_s27   ;;  %s2040_s26 = sphi %s2128_s26, %s2520_s26   ;;  %s2036_s25 = sphi %s2126_s25, %s2519_s25  }
   0x7   : > { %s2151_s14 = sadd.s32 1, %s2048_s28   ;;  %s311_s15 = sadd.s32 1, %s2044_s27 }
   0x8   : > { %s308_s16 = ssub.s32 %s2048_s28, %s2151_s14  ;;  %p321_p0 = scmp.ne.s32.totalorder %s2044_s27, %s2040_s26 }
   0x9   : > { %p309_p1 = scmp.eq.s32.totalorder %s308_s16, 0  ;;  %p322_p2 = scmp.eq.s32.totalorder %s2147_s29, 1 }
   0xa   : > { %p327_p3 = scmp.ne.s32.totalorder %s2040_s26, %s2036_s25  ;;  %p328_p4 = scmp.eq.s32.totalorder %s1722_s30, 1 }
   0xb   : > { %s2162_s17 = scalar_select %p309_p1, %s2044_s27, %s311_s15  }
   0xc   : > { %p2164_p5 = por %p322_p2, %p321_p0  ;;  %p2168_p6 = por %p328_p4, %p327_p3 }
   0xd   : > { %2513 = sst [smem:[#allocation5_spill]] %s2162_s17  ;;  %p1725_p7 = scmp.ge.s32.totalorder %s2048_s28, 1 }
   0xe   : > { %p392_p8 = scmp.lt.s32.totalorder %s2048_s28, 3 }
  0x10   : > { %p393_p9 = pnand %p1725_p7, %p392_p8 }
  0x11   : > { %s1727_s20 = sshll.u32 (!%p393_p9), %s2147_s29, 1  ;;  %s2516_s0 = sld [smem:[#allocation6_spill]] (!%p393_p9) }
  0x12   : > { %396 = sbr.rel (%p393_p9) target bundleno = 1987 (0x7c3), region = 72  ;;  %p438_p10 = scmp.lt.s32.totalorder (!%p393_p9), %s1727_s20, 3 }
  0x13   : > { %s2517_s1 = sld [smem:[#allocation7_spill]] (!%p393_p9)  ;;  %s2051_s22 = smov (!%p393_p9), 64  }
  0x14   : > { %s2053_s23 = smov (!%p393_p9), 32   ;;  %s2054_s15 = smov (!%p393_p9), 16  }
  0x17   : > { %vm450_vm0 = vcmask 261120   ;;  %v1732_v0 = vld [vmem:[%s2499_s2 + $0x10] sm:$0xff]  ;;  %v448_v1 = vld [vmem:[%s2499_s2] sm:$0xff]  ;;  %s2524_s20 = smov (!%p438_p10, %s1727_s20), 3  ;;  %v1733_v6 = vld [vmem:[%s2499_s2 + $0x18] sm:$0xff]  ;;  %v2050_v11 = vmov 0.0  }
  0x18   : > { %1842 = vmatprep.mubr.msk.f32.mxu1 %vm450_vm0, %v1732_v0  ;;  %1831 = vmatprep.mubr.msk.f32.mxu0 %vm450_vm0, %v448_v1  ;;  %s1765_s30 = sshll.u32 %s2524_s20, 4  ;;  %v449_v7 = vld [vmem:[%s2499_s2 + $0x8] sm:$0xff]  ;;  %v1736_v8 = vld [vmem:[%s2499_s2 + $0x20] sm:$0xff]  ;;  %vm708_vm1 = vcmask 523264   ;;  %vm2052_vm2 = vmmov 0   ;;  %vm830_vm5 = vcmask 130048  }
  0x19   : > { %s442_s17 = scalar_lea.vmem %s2516_s0, %s1765_s30  ;;  %v1737_v9 = vld [vmem:[%s2499_s2 + $0x28] sm:$0xff]  ;;  %v726_v10 = vld [vmem:[%s2517_s1 + $0x78] sm:$0xff]  ;;  %v725_v12 = vld [vmem:[%s2517_s1 + $0x70] sm:$0xff]  ;;  %vm1083_vm6 = vcmask 785408   ;;  %vm1161_vm8 = vcmask 64512   ;;  %vm1408_vm9 = vcmask 392192  }
  0x1a   : > { %v447_v2 = vld [vmem:[%s442_s17 + $0x18] sm:$0xff]  ;;  %v446_v3 = vld [vmem:[%s442_s17 + $0x10] sm:$0xff]  ;;  %v445_v4 = vld [vmem:[%s442_s17 + $0x8] sm:$0xff]  ;;  %vm1490_vm11 = vcmask 1043456   ;;  %vm1486_vm12 = vcmask 31744   ;;  %s1762_s20 = sshll.u32 %s2147_s29, 5 }
  0x1b   : > { %1834 = vmatprep.subr.mxu1 %v447_v2  ;;  %1823 = vmatprep.subr.mxu0 %v447_v2  ;;  %v444_v5 = vld [vmem:[%s442_s17] sm:$0xff]  ;;  %v724_v13 = vld [vmem:[%s2517_s1 + $0x68] sm:$0xff]  ;;  %v722_v15 = vld [vmem:[%s2517_s1 + $0x58] sm:$0xff]  ;;  %s2462_s0 = scalar_lea.hbm %s2510_s13, %s1762_s20  ;;  %s2055_s29 = smov [#allocation2]  }
  0x1c   : > { %1835 = vmatpush3.msra.mxu1 %v447_v2  ;;  %1824 = vmatpush3.msra.mxu0 %v447_v2  ;;  %v723_v14 = vld [vmem:[%s2517_s1 + $0x60] sm:$0xff]  ;;  %v721_v16 = vld [vmem:[%s2517_s1 + $0x50] sm:$0xff]  ;;  %v720_v17 = vld [vmem:[%s2517_s1 + $0x48] sm:$0xff] }
  0x1d   : > { %1836 = vmatprep.subr.mxu1 %v446_v3  ;;  %1825 = vmatprep.subr.mxu0 %v446_v3  ;;  %v719_v18 = vld [vmem:[%s2517_s1 + $0x40] sm:$0xff]  ;;  %v718_v19 = vld [vmem:[%s2517_s1 + $0x38] sm:$0xff]  ;;  %v717_v20 = vld [vmem:[%s2517_s1 + $0x30] sm:$0xff] }
  0x1e   : > { %1837 = vmatpush3.msra.mxu1 %v446_v3  ;;  %1826 = vmatpush3.msra.mxu0 %v446_v3  ;;  %v716_v21 = vld [vmem:[%s2517_s1 + $0x28] sm:$0xff]  ;;  %v715_v22 = vld [vmem:[%s2517_s1 + $0x20] sm:$0xff]  ;;  %v714_v23 = vld [vmem:[%s2517_s1 + $0x18] sm:$0xff] }
  0x1f   : > { %1838 = vmatprep.subr.mxu1 %v445_v4  ;;  %1827 = vmatprep.subr.mxu0 %v445_v4  ;;  %v713_v24 = vld [vmem:[%s2517_s1 + $0x10] sm:$0xff]  ;;  %v712_v25 = vld [vmem:[%s2517_s1 + $0x8] sm:$0xff]  ;;  %v711_v26 = vld [vmem:[%s2517_s1] sm:$0xff] }
  0x20   : > { %1839 = vmatpush3.msra.mxu1 %v445_v4  ;;  %1828 = vmatpush3.msra.mxu0 %v445_v4  ;;  %v734_v27 = vld [vmem:[%s2517_s1 + $0xb8] sm:$0xff]  ;;  %v733_v28 = vld [vmem:[%s2517_s1 + $0xb0] sm:$0xff]  ;;  %v732_v29 = vld [vmem:[%s2517_s1 + $0xa8] sm:$0xff] }
  0x21   : > { %1840 = vmatprep.subr.mxu1 %v444_v5  ;;  %1829 = vmatprep.subr.mxu0 %v444_v5  ;;  %v731_v30 = vld [vmem:[%s2517_s1 + $0xa0] sm:$0xff]  ;;  %v730_v31 = vld [vmem:[%s2517_s1 + $0x98] sm:$0xff]  ;;  %v729_v32 = vld [vmem:[%s2517_s1 + $0x90] sm:$0xff] }
  0x22   : > { %1841 = vmatpush3.msra.mxu1 %v444_v5  ;;  %1830 = vmatpush3.msra.mxu0 %v444_v5  ;;  %v728_v33 = vld [vmem:[%s2517_s1 + $0x88] sm:$0xff]  ;;  %v727_v34 = vld [vmem:[%s2517_s1 + $0x80] sm:$0xff]  ;;  %v1746_v58 = vld [vmem:[%s2502_s5 + $0x10] sm:$0xff] }
  0x23   : > { %1843 = vmatmul.mubr.msk.f32.vlgmr.msra.gmra.mxu1 %vm450_vm0, %v1733_v6  ;;  %1845 = vmatprep.subr.mxu0 %v447_v2  ;;  %v1740_v45 = vld [vmem:[%s2500_s3] ss:$0 sm:$0xff]  ;;  %v1744_v57 = vld [vmem:[%s2502_s5 + $0x8] sm:$0xff]  ;;  %v1075_v59 = vld [vmem:[%s2501_s4 + $0x58] sm:$0xff] }
  0x24   : > { %1832 = vmatmul.mubr.msk.f32.vlgmr.msra.gmra.mxu0 %vm450_vm0, %v449_v7  ;;  %748 = vmatprep.subr.mxu1 %v2050_v11  ;;  %v829_v55 = vld [vmem:[%s2502_s5] sm:$0xff]  ;;  %v1074_v60 = vld [vmem:[%s2501_s4 + $0x50] sm:$0xff]  ;;  %v1073_v61 = vld [vmem:[%s2501_s4 + $0x48] sm:$0xff] }
  0x25   : > { %1846 = vmatpush3.msra.mxu0 %v447_v2  ;;  %1853 = vmatprep.mubr.msk.f32.mxu0 %vm450_vm0, %v1736_v8  ;;  %v1072_v62 = vld [vmem:[%s2501_s4 + $0x40] sm:$0xff]  ;;  %v1071_v63 = vld [vmem:[%s2501_s4 + $0x38] sm:$0xff]  ;;  %v1070_v0 = vld [vmem:[%s2501_s4 + $0x30] sm:$0xff] }
  0x26   : > { %1847 = vmatprep.subr.mxu0 %v446_v3  ;;  %749 = vmatpush1.msra.mxu1 %v726_v10  ;;  %v1069_v1 = vld [vmem:[%s2501_s4 + $0x28] sm:$0xff]  ;;  %v1068_v2 = vld [vmem:[%s2501_s4 + $0x20] sm:$0xff] }
  0x27   : > { %1848 = vmatpush3.msra.mxu0 %v446_v3  ;;  %750 = vmatprep.subr.mxu1 %v2050_v11  ;;  %v1067_v3 = vld [vmem:[%s2501_s4 + $0x18] sm:$0xff]  ;;  %v1064_v6 = vld [vmem:[%s2501_s4] sm:$0xff] }
  0x28   : > { %1849 = vmatprep.subr.mxu0 %v445_v4  ;;  %751 = vmatpush1.msra.mxu1 %v725_v12 }
  0x29   : > { %1850 = vmatpush3.msra.mxu0 %v445_v4  ;;  %752 = vmatprep.subr.mxu1 %v2050_v11  ;;  %v1066_v4 = vld [vmem:[%s2501_s4 + $0x10] sm:$0xff] }
  0x2a   : > { %1851 = vmatprep.subr.mxu0 %v444_v5  ;;  %753 = vmatpush1.msra.mxu1 %v724_v13 }
  0x2b   : > { %1852 = vmatpush3.msra.mxu0 %v444_v5  ;;  %754 = vmatprep.subr.mxu1 %v2050_v11  ;;  %v1065_v5 = vld [vmem:[%s2501_s4 + $0x8] sm:$0xff] }
  0x2c   : > { %1854 = vmatmul.mubr.msk.f32.vlgmr.msra.gmra.mxu0 %vm450_vm0, %v1737_v9  ;;  %1856 = vmatprep.subr.mxu0 %v2050_v11 }
  0x2d   : > { %755 = vmatpush1.msra.mxu1 %v723_v14  ;;  %1860 = vmatprep.mubr.msk.f32.mxu0 %vm2052_vm2, %v2050_v11 }
  0x2e   : > { %756 = vmatprep.subr.mxu1 %v2050_v11 }
  0x2f   : > { %757 = vmatpush1.msra.mxu1 %v722_v15 }
  0x30   : > { %758 = vmatprep.subr.mxu1 %v2050_v11 }
  0x31   : > { %759 = vmatpush1.msra.mxu1 %v721_v16 }
  0x32   : > { %760 = vmatprep.subr.mxu1 %v2050_v11 }
  0x33   : > { %761 = vmatpush1.msra.mxu1 %v720_v17 }
  0x34   : > { %762 = vmatprep.subr.mxu1 %v2050_v11 }
  0x35   : > { %763 = vmatpush1.msra.mxu1 %v719_v18  ;;  %v1748_v18 = vld [vmem:[%s2503_s6] ss:$0 sm:$0xff] }
  0x36   : > { %764 = vmatprep.subr.mxu1 %v2050_v11 }
  0x37   : > { %765 = vmatpush1.msra.mxu1 %v718_v19 }
  0x38   : > { %766 = vmatprep.subr.mxu1 %v2050_v11 }
  0x39   : > { %767 = vmatpush1.msra.mxu1 %v717_v20 }
  0x3a   : > { %768 = vmatprep.subr.mxu1 %v2050_v11 }
  0x3b   : > { %769 = vmatpush1.msra.mxu1 %v716_v21 }
  0x3c   : > { %770 = vmatprep.subr.mxu1 %v2050_v11 }
  0x3d   : > { %771 = vmatpush1.msra.mxu1 %v715_v22 }
  0x3e   : > { %772 = vmatprep.subr.mxu1 %v2050_v11 }
  0x3f   : > { %773 = vmatpush1.msra.mxu1 %v714_v23  ;;  %v1160_v23 = vld [vmem:[%s2505_s8] sm:$0xf] }
  0x40   : > { %774 = vmatprep.subr.mxu1 %v2050_v11 }
  0x41   : > { %775 = vmatpush1.msra.mxu1 %v713_v24 }
  0x42   : > { %776 = vmatprep.subr.mxu1 %v2050_v11 }
  0x43   : > { %777 = vmatpush1.msra.mxu1 %v712_v25  ;;  %v1751_v25 = vld [vmem:[%s2505_s8 + $0x4] sm:$0xf] }
  0x44   : > { %778 = vmatprep.subr.mxu1 %v2050_v11 }
  0x45   : > { %779 = vmatpush1.msra.mxu1 %v711_v26  ;;  %v1753_v26 = vld [vmem:[%s2505_s8 + $0x8] sm:$0xf] }
  0x46   : > { %796 = vmatprep.subr.mxu1 %v2050_v11 }
  0x47   : > { %797 = vmatpush2.msra.mxu1 %v734_v27  ;;  %v1400_v27 = vld [vmem:[%s2504_s7 + $0x28] sm:$0xff] }
  0x48   : > { %798 = vmatprep.subr.mxu1 %v2050_v11 }
  0x49   : > { %799 = vmatpush2.msra.mxu1 %v733_v28  ;;  %v1399_v28 = vld [vmem:[%s2504_s7 + $0x20] sm:$0xff] }
  0x4a   : > { %800 = vmatprep.subr.mxu1 %v2050_v11 }
  0x4b   : > { %801 = vmatpush2.msra.mxu1 %v732_v29  ;;  %v1398_v29 = vld [vmem:[%s2504_s7 + $0x18] sm:$0xff] }
  0x4c   : > { %802 = vmatprep.subr.mxu1 %v2050_v11 }
  0x4d   : > { %803 = vmatpush2.msra.mxu1 %v731_v30  ;;  %v1397_v30 = vld [vmem:[%s2504_s7 + $0x10] sm:$0xff] }
  0x4e   : > { %804 = vmatprep.subr.mxu1 %v2050_v11 }
  0x4f   : > { %805 = vmatpush2.msra.mxu1 %v730_v31  ;;  %v1396_v31 = vld [vmem:[%s2504_s7 + $0x8] sm:$0xff] }
  0x50   : > { %806 = vmatprep.subr.mxu1 %v2050_v11 }
  0x51   : > { %807 = vmatpush2.msra.mxu1 %v729_v32  ;;  %v1395_v32 = vld [vmem:[%s2504_s7] sm:$0xff] }
  0x52   : > { %808 = vmatprep.subr.mxu1 %v2050_v11 }
  0x53   : > { %809 = vmatpush2.msra.mxu1 %v728_v33 }
  0x54   : > { %810 = vmatprep.subr.mxu1 %v2050_v11 }
  0x55   : > { %811 = vmatpush2.msra.mxu1 %v727_v34 }
  0x56   : > { %1919 = vmatprep.subr.mxu1 %v2050_v11 }
  0xe3   : > { %v1844_v35 = vpop.f32.mrf.mxu1 }
  0xe4   : > { %v1833_v37 = vpop.f32.mrf.mxu0 }
  0xe5   : > { %v607_v36 = vpop.f32.mrf.mxu1 }
  0xe6   : > { %702 = vrot.lane.b32.xlu0 %v607_v36, %s2051_s22  ;;  %v523_v38 = vpop.f32.mrf.mxu0 }
  0xea   : > { %704 = vrot.lane.b32.xlu0 %v1844_v35, %s2051_s22 }
  0xec   : > { %v1855_v39 = vpop.f32.mrf.mxu0 }
  0xee   : > { %v691_v40 = vpop.f32.mrf.mxu0 }
  0xef   : > { %1741 = vmatprep.mubr.msk.f32.mxu1 %vm708_vm1, %v691_v40 }
 0x158   : > { %v703_v41 = vpop.permute.xlu0 %702 }
 0x159   : > { %v709_v42 = vsel %vm708_vm1, %v523_v38, %v703_v41 }
 0x15a   : > { %813 = vmatmul.mubr.f32.vlgmr.msra.gmra.mxu1 %v709_v42 }
 0x15b   : > { %1742 = vmatprep.mubr.msk.f32.mxu1 %vm708_vm1, %v1855_v39  ;;  %1920 = vmatpush3.msra.mxu1 %v1400_v27 }
 0x15c   : > { %v705_v43 = vpop.permute.xlu0 %704  ;;  %1921 = vmatprep.subr.mxu1 %v2050_v11 }
 0x15d   : > { %v710_v44 = vsel %vm708_vm1, %v1833_v37, %v705_v43  ;;  %1922 = vmatpush3.msra.mxu1 %v1399_v28  ;;  %v1755_v43 = vld [vmem:[%s2506_s9] ss:$0 sm:$0xff] }
 0x15e   : > { %818 = vmatmul.mubr.f32.gmra.mxu1 %v710_v44  ;;  %1923 = vmatprep.subr.mxu1 %v2050_v11 }
 0x15f   : > { %1931 = vmatprep.mubr.msk.f32.mxu1 %vm2052_vm2, %v2050_v11  ;;  %1924 = vmatpush3.msra.mxu1 %v1398_v29 }
 0x160   : > { %1925 = vmatprep.subr.mxu1 %v2050_v11 }
 0x161   : > { %1926 = vmatpush3.msra.mxu1 %v1397_v30 }
 0x162   : > { %1927 = vmatprep.subr.mxu1 %v2050_v11 }
 0x163   : > { %1928 = vmatpush3.msra.mxu1 %v1396_v31 }
 0x164   : > { %1929 = vmatprep.subr.mxu1 %v2050_v11 }
 0x165   : > { %1930 = vmatpush3.msra.mxu1 %v1395_v32 }
 0x21a   : > { %v814_v46 = vpop.f32.mrf.mxu1 }
 0x21b   : > { %v815_v48 = vadd.f32 %v1740_v45, %v814_v46 }
 0x21c   : > { %v816_v47 = vpop.f32.mrf.mxu1 }
 0x21d   : > { %v825_v52 = vmul.f32 0.2, %v815_v48  ;;  %vm823_vm4 = vcmp.gt.f32.partialorder %v815_v48, 0.0 }
 0x21e   : > { %v819_v49 = vpop.f32.mrf.mxu1 }
 0x21f   : > { %v820_v50 = vadd.f32 %v1740_v45, %v819_v49  ;;  %v827_v56 = vsel %vm823_vm4, %v815_v48, %v825_v52  ;;  %v1485_v48 = vld [vmem:[%s2507_s10] sm:$0x3] }
 0x220   : > { %v821_v51 = vpop.f32.mrf.mxu1 }
 0x221   : > { %vm824_vm3 = vcmp.gt.f32.partialorder %v820_v50, 0.0  ;;  %v826_v53 = vmul.f32 0.2, %v820_v50 }
 0x223   : > { %v828_v54 = vsel %vm824_vm3, %v820_v50, %v826_v53  ;;  %v1564_v50 = vld [vmem:[%s2508_s11] sm:$0xff] }
 0x224   : > { %1857 = vmatpush3.msra.mxu0 %v828_v54  ;;  %v1759_v53 = vld [vmem:[%s2509_s12] ss:$0 sm:$0xff] }
 0x225   : > { %1858 = vmatprep.subr.mxu0 %v2050_v11 }
 0x226   : > { %1859 = vmatpush3.msra.mxu0 %v827_v56 }
 0x227   : > { %1861 = vmatmul.mubr.msk.f32.vlgmr.msra.gmra.mxu0 %vm830_vm5, %v829_v55  ;;  %1863 = vmatprep.subr.mxu0 %v2050_v11 }
 0x228   : > { %1864 = vmatpush3.msra.mxu0 %v828_v54  ;;  %1867 = vmatprep.mubr.msk.f32.mxu0 %vm2052_vm2, %v2050_v11 }
 0x229   : > { %1865 = vmatprep.subr.mxu0 %v2050_v11 }
 0x22a   : > { %1866 = vmatpush3.msra.mxu0 %v827_v56 }
 0x22b   : > { %1868 = vmatmul.mubr.msk.f32.vlgmr.msra.gmra.mxu0 %vm830_vm5, %v1744_v57  ;;  %1870 = vmatprep.subr.mxu0 %v2050_v11 }
 0x22c   : > { %1871 = vmatpush3.msra.mxu0 %v828_v54  ;;  %1874 = vmatprep.mubr.msk.f32.mxu0 %vm2052_vm2, %v2050_v11 }
 0x22d   : > { %1872 = vmatprep.subr.mxu0 %v2050_v11 }
 0x22e   : > { %1873 = vmatpush3.msra.mxu0 %v827_v56 }
 0x22f   : > { %1875 = vmatmul.mubr.msk.f32.vlgmr.msra.gmra.mxu0 %vm830_vm5, %v1746_v58  ;;  %1877 = vmatprep.subr.mxu0 %v2050_v11 }
 0x230   : > { %1901 = vmatprep.mubr.msk.f32.mxu0 %vm2052_vm2, %v2050_v11  ;;  %1878 = vmatpush3.msra.mxu0 %v1075_v59 }
 0x231   : > { %1879 = vmatprep.subr.mxu0 %v2050_v11 }
 0x232   : > { %1880 = vmatpush3.msra.mxu0 %v1074_v60 }
 0x233   : > { %1881 = vmatprep.subr.mxu0 %v2050_v11 }
 0x234   : > { %1882 = vmatpush3.msra.mxu0 %v1073_v61 }
 0x235   : > { %1883 = vmatprep.subr.mxu0 %v2050_v11 }
 0x236   : > { %1884 = vmatpush3.msra.mxu0 %v1072_v62 }
 0x237   : > { %1885 = vmatprep.subr.mxu0 %v2050_v11 }
 0x238   : > { %1886 = vmatpush3.msra.mxu0 %v1071_v63 }
 0x239   : > { %1887 = vmatprep.subr.mxu0 %v2050_v11 }
 0x23a   : > { %1888 = vmatpush3.msra.mxu0 %v1070_v0 }
 0x23b   : > { %1889 = vmatprep.subr.mxu0 %v2050_v11 }
 0x23c   : > { %1890 = vmatpush3.msra.mxu0 %v1069_v1 }
 0x23d   : > { %1891 = vmatprep.subr.mxu0 %v2050_v11 }
 0x23e   : > { %1892 = vmatpush3.msra.mxu0 %v1068_v2 }
 0x23f   : > { %1893 = vmatprep.subr.mxu0 %v2050_v11 }
 0x240   : > { %1894 = vmatpush3.msra.mxu0 %v1067_v3 }
 0x241   : > { %1895 = vmatprep.subr.mxu0 %v2050_v11 }
 0x242   : > { %1896 = vmatpush3.msra.mxu0 %v1066_v4 }
 0x243   : > { %1897 = vmatprep.subr.mxu0 %v2050_v11 }
 0x244   : > { %1898 = vmatpush3.msra.mxu0 %v1065_v5 }
 0x245   : > { %1899 = vmatprep.subr.mxu0 %v2050_v11 }
 0x246   : > { %1900 = vmatpush3.msra.mxu0 %v1064_v6 }
 0x247   : > { %1904 = vmatprep.subr.mxu0 %v2050_v11 }
 0x2e7   : > { %v900_v7 = vpop.f32.mrf.mxu0 }
 0x2e9   : > { %v1862_v8 = vpop.f32.mrf.mxu0 }
 0x2eb   : > { %v975_v9 = vpop.f32.mrf.mxu0 }
 0x2ec   : > { %1055 = vrot.lane.b32.xlu1 %v975_v9, %s2053_s23 }
 0x2ed   : > { %v1869_v10 = vpop.f32.mrf.mxu0 }
 0x2ef   : > { %v1050_v12 = vpop.f32.mrf.mxu0 }
 0x2f0   : > { %1059 = vrot.lane.b32.xlu1 %v1050_v12, %s2051_s22  ;;  %s434_s22 = sand.u32 1, %s2040_s26  }
 0x2f1   : > { %v1876_v13 = vpop.f32.mrf.mxu0  ;;  %s1726_s17 = sshll.u32 %s434_s22, 1  ;;  %s1650_s1 = scalar_lea.sflag [#allocation3], %s434_s22 }
 0x35e   : > { %v1056_v14 = vpop.permute.xlu1 %1055 }
 0x35f   : > { %v1062_v15 = vsel %vm450_vm0, %v900_v7, %v1056_v14 }
 0x362   : > { %v1060_v16 = vpop.permute.xlu1 %1059 }
 0x363   : > { %v1063_v17 = vsel %vm708_vm1, %v1062_v15, %v1060_v16 }
 0x364   : > { %1902 = vmatmul.mubr.msk.f32.vlgmr.msra.gmra.mxu0 %vm1083_vm6, %v1063_v17 }
 0x365   : > { %1906 = vmatprep.mubr.msk.f32.mxu0 %vm2052_vm2, %v2050_v11 }
 0x424   : > { %v1153_v19 = vpop.f32.mrf.mxu0 }
 0x425   : > { %v1154_v20 = vadd.f32 %v1748_v18, %v1153_v19 }
 0x426   : > { %v1903_v21 = vpop.f32.mrf.mxu0 }
 0x427   : > { %vm1157_vm7 = vcmp.gt.f32.partialorder %v1154_v20, 0.0  ;;  %v1158_v22 = vmul.f32 0.2, %v1154_v20 }
 0x429   : > { %v1159_v24 = vsel %vm1157_vm7, %v1154_v20, %v1158_v22 }
 0x42a   : > { %1905 = vmatpush3.msra.mxu0 %v1159_v24 }
 0x42b   : > { %1907 = vmatmul.mubr.msk.f32.vlgmr.msra.gmra.mxu0 %vm1161_vm8, %v1160_v23  ;;  %1909 = vmatprep.subr.mxu0 %v2050_v11 }
 0x42c   : > { %1910 = vmatpush3.msra.mxu0 %v1159_v24  ;;  %1911 = vmatprep.mubr.msk.f32.mxu0 %vm2052_vm2, %v2050_v11 }
 0x42d   : > { %1914 = vmatprep.subr.mxu0 %v2050_v11 }
 0x42f   : > { %1912 = vmatmul.mubr.msk.f32.vlgmr.msra.gmra.mxu0 %vm1161_vm8, %v1751_v25 }
 0x430   : > { %1915 = vmatpush3.msra.mxu0 %v1159_v24  ;;  %1916 = vmatprep.mubr.msk.f32.mxu0 %vm2052_vm2, %v2050_v11 }
 0x431   : > { %1934 = vmatprep.subr.mxu0 %v2050_v11 }
 0x433   : > { %1917 = vmatmul.mubr.msk.f32.vlgmr.msra.gmra.mxu0 %vm1161_vm8, %v1753_v26 }
 0x434   : > { %1936 = vmatprep.mubr.msk.f32.mxu0 %vm2052_vm2, %v2050_v11 }
 0x4eb   : > { %v1231_v33 = vpop.f32.mrf.mxu0 }
 0x4ed   : > { %v1908_v34 = vpop.f32.mrf.mxu0 }
 0x4ef   : > { %v1306_v35 = vpop.f32.mrf.mxu0 }
 0x4f0   : > { %1386 = vrot.lane.b32.xlu0 %v1306_v35, %s2054_s15 }
 0x4f1   : > { %v1913_v36 = vpop.f32.mrf.mxu0 }
 0x4f3   : > { %v1381_v37 = vpop.f32.mrf.mxu0 }
 0x4f4   : > { %1390 = vrot.lane.b32.xlu1 %v1381_v37, %s2053_s23  ;;  %s436_s23 = scalar_lea.vmem [#allocation2], %s1726_s17  ;;  %s1992_s17 = sshll.u32 %s2055_s29, 4  ;;  %s1993_s17 = int_to_ptr.vmem [resolvable:$false] %s1992_s17 }
 0x4f5   : > { %v1918_v38 = vpop.f32.mrf.mxu0  ;;  %s1663_s21 = sshll.u32 %s436_s23, 4  ;;  %s1994_s16 = scalar_lea.vmem %s1993_s17, 64  ;;  %s1664_s21 = int_to_ptr.vmem [resolvable:$true] %s1663_s21 }
 0x4f6   : > { %s1988_s15 = scalar_lea.vmem %s1664_s21, 32  ;;  %p1995_p0 = scmp.lt.s32.totalorder %s1664_s21, %s1993_s17 }
 0x4f7   : > { %p1989_p11 = scmp.ne.s32.totalorder %s1664_s21, %s1988_s15  ;;  %p1996_p1 = scmp.lt.s32.totalorder %s1994_s16, %s1988_s15 }
 0x4f9   : > { %p1990_p12 = pnand %p1989_p11, %p2164_p5  ;;  %p1997_p2 = por %p1996_p1, %p1995_p0 }
 0x4fb   : > { %p1991_p13 = pneg %p1990_p12 }
 0x4fd   : > { %p1998_p3 = pnand %p1997_p2, %p1991_p13 }
 0x562   : > { %v1387_v39 = vpop.permute.xlu0 %1386 }
 0x563   : > { %v1393_v40 = vsel %vm830_vm5, %v1231_v33, %v1387_v39 }
 0x566   : > { %v1391_v41 = vpop.permute.xlu1 %1390 }
 0x567   : > { %v1394_v42 = vsel %vm450_vm0, %v1393_v40, %v1391_v41 }
 0x568   : > { %1932 = vmatmul.mubr.msk.f32.vlgmr.msra.gmra.mxu1 %vm1408_vm9, %v1394_v42 }
 0x628   : > { %v1478_v44 = vpop.f32.mrf.mxu1 }
 0x629   : > { %v1479_v45 = vadd.f32 %v1755_v43, %v1478_v44 }
 0x62a   : > { %v1933_v46 = vpop.f32.mrf.mxu1 }
 0x62b   : > { %vm1482_vm10 = vcmp.gt.f32.partialorder %v1479_v45, 0.0  ;;  %v1483_v47 = vmul.f32 0.2, %v1479_v45 }
 0x62d   : > { %v1484_v49 = vsel %vm1482_vm10, %v1479_v45, %v1483_v47 }
 0x62e   : > { %1935 = vmatpush3.msk.msra.mxu0 %vm1490_vm11, %v1484_v49 }
 0x62f   : > { %1937 = vmatmul.mubr.msk.f32.vlgmr.msra.gmra.mxu0 %vm1486_vm12, %v1485_v48  ;;  %1939 = vmatprep.subr.mxu0 %v2050_v11 }
 0x630   : > { %1940 = vmatpush3.msra.mxu0 %v1564_v50  ;;  %1941 = vmatprep.mubr.msk.f32.mxu0 %vm2052_vm2, %v2050_v11 }
 0x6ef   : > { %v1560_v51 = vpop.f32.mrf.mxu0 }
 0x6f0   : > { %1942 = vmatmul.mubr.msk.f32.vlgmr.msra.gmra.mxu0 %vm1161_vm8, %v1560_v51 }
 0x6f1   : > { %v1938_v52 = vpop.f32.mrf.mxu0 }
 0x7b0   : > { %v1641_v54 = vpop.f32.mrf.mxu0 }
 0x7b1   : > { %v1642_v55 = vadd.f32 %v1759_v53, %v1641_v54 }
 0x7b2   : > { %v1943_v56 = vpop.f32.mrf.mxu0 }
 0x7b3   : > { %vm1645_vm13 = vcmp.gt.f32.partialorder %v1642_v55, 0.0  ;;  %v1646_v57 = vmul.f32 0.2, %v1642_v55 }
 0x7b5   : > { %v1647_v11 = vsel %vm1645_vm13, %v1642_v55, %v1646_v57 }
 0x7b6   : > { %1648 = vst [vmem:[%s436_s23] sm:$0x3] %v1647_v11 }
 0x7b7   : > { %2001 = shalt.err (!%p1998_p3)
}
 0x7b8   : > { %s2002_s20 = scalar_lea.hbm %s2462_s0, 32  ;;  %s2006_s24 = scalar_lea.hbm %s2510_s13, 64 }
 0x7b9   : > { %p2003_p4 = scmp.ne.s32.totalorder %s2462_s0, %s2002_s20  ;;  %p2007_p9 = scmp.lt.s32.totalorder %s2462_s0, %s2510_s13 }
 0x7ba   : > { %p2008_p10 = scmp.lt.s32.totalorder %s2006_s24, %s2002_s20 }
 0x7bb   : > { %p2004_p7 = pnand %p2003_p4, %p2164_p5 }
 0x7bc   : > { %p2009_p11 = por %p2008_p10, %p2007_p9 }
 0x7bd   : > { %p2005_p8 = pneg %p2004_p7 }
 0x7bf   : > { %p2010_p12 = pnand %p2009_p11, %p2005_p8 }
 0x7c1   : > { %2013 = shalt.err (!%p2010_p12)
}
 0x7c2   : > { %1944 = dma.vmem_to_hbm [thread:$0]  (%p2164_p5), %s1664_s21, 32, %s2462_s0, %s1650_s1  }
 0x7c3 PF: > { %p1950_p13 = scmp.ge.s32.totalorder %s2048_s28, 2  ;;  %s1675_s15 = sand.u32 1, %s2036_s25  }
 0x7c4   : > { %s1676_s17 = scalar_lea.sflag [#allocation3], %s1675_s15 }
 0x7c5   : > { %p1947_p0 = pnand %p1950_p13, %p2168_p6 }
 0x7c7   : > { %p1948_p1 = pneg %p1947_p0 }
 0x7c9   : > { %2031 = dma.done.wait (%p1948_p1), %s1676_s17, 32  }
 0x7ca   : > { %2033 = vsyncadd (%p1948_p1), %s1676_s17, 4294967264  ;;  %s2518_s16 = sld [smem:[#allocation5_spill]]  ;;  %p23_p2 = scmp.ge.s32.totalorder %s2151_s14, 4  }
 0x7cb   : > { %s2519_s25 = smov %s2040_s26  ;;  %s2520_s26 = smov %s2044_s27 }
 0x7cc   : > { %s2522_s28 = smov %s2151_s14  ;;  %25 = sbr.rel (!%p23_p2) target bundleno = 6 (0x6), region = 113 }
 0x7d0   : > { %s2521_s27 = smov %s2518_s16 }
 0x7d1   :  { %1681 = vsyncpa [#allocation3], 1 }
 0x7d2   :  { %1683 = vsyncpa [#allocation3 + $0x1], 1 }

</bundles_post_ra>
